<compile_context>
chip_gen: v7x
topology: tpu7x:2x2x1
jax: 0.10.0
libtpu: 0.0.40
codegen_flags: <defaults>
</compile_context>

<pallas_src>
import jax
import jax.numpy as jnp
from jax import lax
from jax.experimental import pallas as pl
from jax.experimental.pallas import tpu as pltpu

KSIZE = 7          # kernel_size=7 (PyTorch default for this module)
PAD = 3            # padding = 3 for kernel_size 7


# ------------------------------ Pallas kernel -------------------------------

def _spatial_attention_kernel(x_ref, w_ref, o_ref, pad_ref, shift_ref):
    # x_ref     : (N, C, H, W)            VMEM  -- full input
    # w_ref     : (7, 7)                  SMEM  -- conv1 weight (scalar reads)
    # o_ref     : (N, H, W)               VMEM  -- sigmoid(conv(max_c(x)))
    # pad_ref   : (N, H+6, W+6)           VMEM scratch -- zero-padded channel max
    # shift_ref : (7, N, H+6, W)          VMEM scratch -- 7 lane-shifted copies
    N, C, H, W = x_ref.shape

    # ---- channel max (torch.max over dim=1, keepdim) -- unrolled over C ----
    m = x_ref[:, 0, :, :]                                   # (N, H, W)
    for c in range(1, C):
        m = jnp.maximum(m, x_ref[:, c, :, :])

    # ---- zero-pad into scratch (padding=3, "same" conv) ----
    # Single grid step -> this zeroing happens exactly once per call.
    pad_ref[...] = jnp.zeros_like(pad_ref)
    pad_ref[:, PAD:PAD + H, PAD:PAD + W] = m

    # ---- hoist lane shifts: 7 lane-offset slices, materialized once ----
    for kw in range(KSIZE):
        shift_ref[kw] = pad_ref[:, :, kw:kw + W]            # (N, H+6, W)

    # ---- 7x7 cross-correlation (PyTorch conv semantics, no bias) ----
    # 7 independent per-kw partial accumulators (sublane-offset reads only),
    # tree-summed afterwards; f32 accumulation throughout.
    parts = []
    for kw in range(KSIZE):
        p = w_ref[0, kw] * shift_ref[kw, :, 0:H, :]
        for kh in range(1, KSIZE):
            p = p + w_ref[kh, kw] * shift_ref[kw, :, kh:kh + H, :]
        parts.append(p)
    acc = (((parts[0] + parts[1]) + (parts[2] + parts[3]))
           + ((parts[4] + parts[5]) + parts[6]))            # (N, H, W) f32

    # ---- sigmoid (exp on EUP, exact divide keeps f32 accuracy) ----
    o_ref[...] = 1.0 / (1.0 + jnp.exp(-acc))


# -------------------------------- wrapper ------------------------------------

def spatial_attention(x, w):
    """x: (N, C, H, W) float32;  w: (1, 1, 7, 7) conv weight (torch layout)."""
    N, C, H, W = x.shape
    w2d = w.reshape(KSIZE, KSIZE).astype(jnp.float32)
    out = pl.pallas_call(
        _spatial_attention_kernel,
        out_shape=jax.ShapeDtypeStruct((N, H, W), jnp.float32),
        in_specs=[
            pl.BlockSpec(memory_space=pltpu.MemorySpace.VMEM),   # x: full block
            pl.BlockSpec(memory_space=pltpu.MemorySpace.SMEM),   # 7x7 weight
        ],
        out_specs=pl.BlockSpec(memory_space=pltpu.MemorySpace.VMEM),
        scratch_shapes=[
            pltpu.VMEM((N, H + 2 * PAD, W + 2 * PAD), jnp.float32),
            pltpu.VMEM((KSIZE, N, H + 2 * PAD, W), jnp.float32),
        ],
    )(x.astype(jnp.float32), w2d)
    # keepdim channel axis of the PyTorch module (free metadata reshape).
    return out.reshape(N, 1, H, W)


# --------------------------- pure-JAX reference ------------------------------

def spatial_attention_reference(x, w):
    m = jnp.max(x, axis=1, keepdims=True)                       # (N,1,H,W)
    y = lax.conv_general_dilated(
        m, w, window_strides=(1, 1), padding=[(PAD, PAD), (PAD, PAD)],
        dimension_numbers=("NCHW", "OIHW", "NCHW"))
    return 1.0 / (1.0 + jnp.exp(-y))


# ----------------------------------- main ------------------------------------

if __name__ == "__main__":
    key = jax.random.PRNGKey(0)
    kx, kw = jax.random.split(key)
    N, C, H, W = 2, 4, 16, 16
    x = jax.random.normal(kx, (N, C, H, W), jnp.float32)
    # conv1 weight: Conv2d(1, 1, 7, padding=3, bias=False)
    w = 0.1 * jax.random.normal(kw, (1, 1, KSIZE, KSIZE), jnp.float32)

    out = spatial_attention(x, w)
    out = jax.block_until_ready(out)

    ref = spatial_attention_reference(x, w)
    err = float(jnp.max(jnp.abs(out - ref)))
    assert out.shape == (N, 1, H, W), out.shape
    assert err < 1e-5, f"mismatch vs reference: {err}"
    print("KERNEL_OK")
</pallas_src>

<mosaic_0001>
module attributes {stable_mosaic.version = 11 : i64} {
  func.func @_spatial_attention_kernel(%arg0: memref<2x4x16x16xf32, #tpu.memory_space<vmem>>, %arg1: memref<7x7xf32, #tpu.memory_space<smem>>, %arg2: memref<2x16x16xf32, #tpu.memory_space<vmem>>, %arg3: memref<2x22x22xf32, #tpu.memory_space<vmem>>, %arg4: memref<7x2x22x16xf32, #tpu.memory_space<vmem>>) attributes {dimension_semantics = [], scalar_prefetch = 0 : i64, scratch_operands = 2 : i64, tpu.core_type = #tpu.core_type<tc>} {
    %c0 = arith.constant 0 : index
    %c0_0 = arith.constant 0 : index
    %c0_1 = arith.constant 0 : index
    %c0_2 = arith.constant 0 : index
    %0 = vector.load %arg0[%c0, %c0_0, %c0_1, %c0_2] : memref<2x4x16x16xf32, #tpu.memory_space<vmem>>, vector<2x1x16x16xf32>
    %1 = vector.shape_cast %0 : vector<2x1x16x16xf32> to vector<2x16x16xf32>
    %c0_3 = arith.constant 0 : index
    %c1 = arith.constant 1 : index
    %c0_4 = arith.constant 0 : index
    %c0_5 = arith.constant 0 : index
    %2 = vector.load %arg0[%c0_3, %c1, %c0_4, %c0_5] : memref<2x4x16x16xf32, #tpu.memory_space<vmem>>, vector<2x1x16x16xf32>
    %3 = vector.shape_cast %2 : vector<2x1x16x16xf32> to vector<2x16x16xf32>
    %4 = arith.maximumf %1, %3 : vector<2x16x16xf32>
    %c0_6 = arith.constant 0 : index
    %c2 = arith.constant 2 : index
    %c0_7 = arith.constant 0 : index
    %c0_8 = arith.constant 0 : index
    %5 = vector.load %arg0[%c0_6, %c2, %c0_7, %c0_8] : memref<2x4x16x16xf32, #tpu.memory_space<vmem>>, vector<2x1x16x16xf32>
    %6 = vector.shape_cast %5 : vector<2x1x16x16xf32> to vector<2x16x16xf32>
    %7 = arith.maximumf %4, %6 : vector<2x16x16xf32>
    %c0_9 = arith.constant 0 : index
    %c3 = arith.constant 3 : index
    %c0_10 = arith.constant 0 : index
    %c0_11 = arith.constant 0 : index
    %8 = vector.load %arg0[%c0_9, %c3, %c0_10, %c0_11] : memref<2x4x16x16xf32, #tpu.memory_space<vmem>>, vector<2x1x16x16xf32>
    %9 = vector.shape_cast %8 : vector<2x1x16x16xf32> to vector<2x16x16xf32>
    %10 = arith.maximumf %7, %9 : vector<2x16x16xf32>
    %cst = arith.constant 0.000000e+00 : f32
    %11 = vector.broadcast %cst : f32 to vector<2x22x22xf32>
    %c0_12 = arith.constant 0 : index
    %c0_13 = arith.constant 0 : index
    %c0_14 = arith.constant 0 : index
    %12 = vector.load %arg3[%c0_12, %c0_13, %c0_14] : memref<2x22x22xf32, #tpu.memory_space<vmem>>, vector<2x22x22xf32>
    tpu.vector_store %arg3[%c0_12, %c0_13, %c0_14], %11 {strides = array<i32>} : memref<2x22x22xf32, #tpu.memory_space<vmem>>, vector<2x22x22xf32>,
    %c0_15 = arith.constant 0 : index
    %c3_16 = arith.constant 3 : index
    %c3_17 = arith.constant 3 : index
    %13 = vector.load %arg3[%c0_15, %c3_16, %c3_17] : memref<2x22x22xf32, #tpu.memory_space<vmem>>, vector<2x16x16xf32>
    tpu.vector_store %arg3[%c0_15, %c3_16, %c3_17], %10 {strides = array<i32>} : memref<2x22x22xf32, #tpu.memory_space<vmem>>, vector<2x16x16xf32>,
    %c0_18 = arith.constant 0 : index
    %c0_19 = arith.constant 0 : index
    %c0_20 = arith.constant 0 : index
    %14 = vector.load %arg3[%c0_18, %c0_19, %c0_20] : memref<2x22x22xf32, #tpu.memory_space<vmem>>, vector<2x22x16xf32>
    %c0_21 = arith.constant 0 : index
    %c0_22 = arith.constant 0 : index
    %c0_23 = arith.constant 0 : index
    %c0_24 = arith.constant 0 : index
    %15 = vector.load %arg4[%c0_21, %c0_22, %c0_23, %c0_24] : memref<7x2x22x16xf32, #tpu.memory_space<vmem>>, vector<1x2x22x16xf32>
    %16 = vector.shape_cast %15 : vector<1x2x22x16xf32> to vector<2x22x16xf32>
    %17 = vector.shape_cast %14 : vector<2x22x16xf32> to vector<1x2x22x16xf32>
    tpu.vector_store %arg4[%c0_21, %c0_22, %c0_23, %c0_24], %17 {strides = array<i32>} : memref<7x2x22x16xf32, #tpu.memory_space<vmem>>, vector<1x2x22x16xf32>,
    %c0_25 = arith.constant 0 : index
    %c0_26 = arith.constant 0 : index
    %c1_27 = arith.constant 1 : index
    %18 = vector.load %arg3[%c0_25, %c0_26, %c1_27] : memref<2x22x22xf32, #tpu.memory_space<vmem>>, vector<2x22x16xf32>
    %c1_28 = arith.constant 1 : index
    %c0_29 = arith.constant 0 : index
    %c0_30 = arith.constant 0 : index
    %c0_31 = arith.constant 0 : index
    %19 = vector.load %arg4[%c1_28, %c0_29, %c0_30, %c0_31] : memref<7x2x22x16xf32, #tpu.memory_space<vmem>>, vector<1x2x22x16xf32>
    %20 = vector.shape_cast %19 : vector<1x2x22x16xf32> to vector<2x22x16xf32>
    %21 = vector.shape_cast %18 : vector<2x22x16xf32> to vector<1x2x22x16xf32>
    tpu.vector_store %arg4[%c1_28, %c0_29, %c0_30, %c0_31], %21 {strides = array<i32>} : memref<7x2x22x16xf32, #tpu.memory_space<vmem>>, vector<1x2x22x16xf32>,
    %c0_32 = arith.constant 0 : index
    %c0_33 = arith.constant 0 : index
    %c2_34 = arith.constant 2 : index
    %22 = vector.load %arg3[%c0_32, %c0_33, %c2_34] : memref<2x22x22xf32, #tpu.memory_space<vmem>>, vector<2x22x16xf32>
    %c2_35 = arith.constant 2 : index
    %c0_36 = arith.constant 0 : index
    %c0_37 = arith.constant 0 : index
    %c0_38 = arith.constant 0 : index
    %23 = vector.load %arg4[%c2_35, %c0_36, %c0_37, %c0_38] : memref<7x2x22x16xf32, #tpu.memory_space<vmem>>, vector<1x2x22x16xf32>
    %24 = vector.shape_cast %23 : vector<1x2x22x16xf32> to vector<2x22x16xf32>
    %25 = vector.shape_cast %22 : vector<2x22x16xf32> to vector<1x2x22x16xf32>
    tpu.vector_store %arg4[%c2_35, %c0_36, %c0_37, %c0_38], %25 {strides = array<i32>} : memref<7x2x22x16xf32, #tpu.memory_space<vmem>>, vector<1x2x22x16xf32>,
    %c0_39 = arith.constant 0 : index
    %c0_40 = arith.constant 0 : index
    %c3_41 = arith.constant 3 : index
    %26 = vector.load %arg3[%c0_39, %c0_40, %c3_41] : memref<2x22x22xf32, #tpu.memory_space<vmem>>, vector<2x22x16xf32>
    %c3_42 = arith.constant 3 : index
    %c0_43 = arith.constant 0 : index
    %c0_44 = arith.constant 0 : index
    %c0_45 = arith.constant 0 : index
    %27 = vector.load %arg4[%c3_42, %c0_43, %c0_44, %c0_45] : memref<7x2x22x16xf32, #tpu.memory_space<vmem>>, vector<1x2x22x16xf32>
    %28 = vector.shape_cast %27 : vector<1x2x22x16xf32> to vector<2x22x16xf32>
    %29 = vector.shape_cast %26 : vector<2x22x16xf32> to vector<1x2x22x16xf32>
    tpu.vector_store %arg4[%c3_42, %c0_43, %c0_44, %c0_45], %29 {strides = array<i32>} : memref<7x2x22x16xf32, #tpu.memory_space<vmem>>, vector<1x2x22x16xf32>,
    %c0_46 = arith.constant 0 : index
    %c0_47 = arith.constant 0 : index
    %c4 = arith.constant 4 : index
    %30 = vector.load %arg3[%c0_46, %c0_47, %c4] : memref<2x22x22xf32, #tpu.memory_space<vmem>>, vector<2x22x16xf32>
    %c4_48 = arith.constant 4 : index
    %c0_49 = arith.constant 0 : index
    %c0_50 = arith.constant 0 : index
    %c0_51 = arith.constant 0 : index
    %31 = vector.load %arg4[%c4_48, %c0_49, %c0_50, %c0_51] : memref<7x2x22x16xf32, #tpu.memory_space<vmem>>, vector<1x2x22x16xf32>
    %32 = vector.shape_cast %31 : vector<1x2x22x16xf32> to vector<2x22x16xf32>
    %33 = vector.shape_cast %30 : vector<2x22x16xf32> to vector<1x2x22x16xf32>
    tpu.vector_store %arg4[%c4_48, %c0_49, %c0_50, %c0_51], %33 {strides = array<i32>} : memref<7x2x22x16xf32, #tpu.memory_space<vmem>>, vector<1x2x22x16xf32>,
    %c0_52 = arith.constant 0 : index
    %c0_53 = arith.constant 0 : index
    %c5 = arith.constant 5 : index
    %34 = vector.load %arg3[%c0_52, %c0_53, %c5] : memref<2x22x22xf32, #tpu.memory_space<vmem>>, vector<2x22x16xf32>
    %c5_54 = arith.constant 5 : index
    %c0_55 = arith.constant 0 : index
    %c0_56 = arith.constant 0 : index
    %c0_57 = arith.constant 0 : index
    %35 = vector.load %arg4[%c5_54, %c0_55, %c0_56, %c0_57] : memref<7x2x22x16xf32, #tpu.memory_space<vmem>>, vector<1x2x22x16xf32>
    %36 = vector.shape_cast %35 : vector<1x2x22x16xf32> to vector<2x22x16xf32>
    %37 = vector.shape_cast %34 : vector<2x22x16xf32> to vector<1x2x22x16xf32>
    tpu.vector_store %arg4[%c5_54, %c0_55, %c0_56, %c0_57], %37 {strides = array<i32>} : memref<7x2x22x16xf32, #tpu.memory_space<vmem>>, vector<1x2x22x16xf32>,
    %c0_58 = arith.constant 0 : index
    %c0_59 = arith.constant 0 : index
    %c6 = arith.constant 6 : index
    %38 = vector.load %arg3[%c0_58, %c0_59, %c6] : memref<2x22x22xf32, #tpu.memory_space<vmem>>, vector<2x22x16xf32>
    %c6_60 = arith.constant 6 : index
    %c0_61 = arith.constant 0 : index
    %c0_62 = arith.constant 0 : index
    %c0_63 = arith.constant 0 : index
    %39 = vector.load %arg4[%c6_60, %c0_61, %c0_62, %c0_63] : memref<7x2x22x16xf32, #tpu.memory_space<vmem>>, vector<1x2x22x16xf32>
    %40 = vector.shape_cast %39 : vector<1x2x22x16xf32> to vector<2x22x16xf32>
    %41 = vector.shape_cast %38 : vector<2x22x16xf32> to vector<1x2x22x16xf32>
    tpu.vector_store %arg4[%c6_60, %c0_61, %c0_62, %c0_63], %41 {strides = array<i32>} : memref<7x2x22x16xf32, #tpu.memory_space<vmem>>, vector<1x2x22x16xf32>,
    %c0_64 = arith.constant 0 : index
    %c0_65 = arith.constant 0 : index
    %42 = memref.load %arg1[%c0_64, %c0_65] : memref<7x7xf32, #tpu.memory_space<smem>>
    %c0_66 = arith.constant 0 : index
    %c0_67 = arith.constant 0 : index
    %c0_68 = arith.constant 0 : index
    %c0_69 = arith.constant 0 : index
    %43 = vector.load %arg4[%c0_66, %c0_67, %c0_68, %c0_69] : memref<7x2x22x16xf32, #tpu.memory_space<vmem>>, vector<1x2x16x16xf32>
    %44 = vector.shape_cast %43 : vector<1x2x16x16xf32> to vector<2x16x16xf32>
    %45 = vector.broadcast %42 : f32 to vector<2x16x16xf32>
    %46 = arith.mulf %45, %44 : vector<2x16x16xf32>
    %c1_70 = arith.constant 1 : index
    %c0_71 = arith.constant 0 : index
    %47 = memref.load %arg1[%c1_70, %c0_71] : memref<7x7xf32, #tpu.memory_space<smem>>
    %c0_72 = arith.constant 0 : index
    %c0_73 = arith.constant 0 : index
    %c1_74 = arith.constant 1 : index
    %c0_75 = arith.constant 0 : index
    %48 = vector.load %arg4[%c0_72, %c0_73, %c1_74, %c0_75] : memref<7x2x22x16xf32, #tpu.memory_space<vmem>>, vector<1x2x16x16xf32>
    %49 = vector.shape_cast %48 : vector<1x2x16x16xf32> to vector<2x16x16xf32>
    %50 = vector.broadcast %47 : f32 to vector<2x16x16xf32>
    %51 = arith.mulf %50, %49 : vector<2x16x16xf32>
    %52 = arith.addf %46, %51 : vector<2x16x16xf32>
    %c2_76 = arith.constant 2 : index
    %c0_77 = arith.constant 0 : index
    %53 = memref.load %arg1[%c2_76, %c0_77] : memref<7x7xf32, #tpu.memory_space<smem>>
    %c0_78 = arith.constant 0 : index
    %c0_79 = arith.constant 0 : index
    %c2_80 = arith.constant 2 : index
    %c0_81 = arith.constant 0 : index
    %54 = vector.load %arg4[%c0_78, %c0_79, %c2_80, %c0_81] : memref<7x2x22x16xf32, #tpu.memory_space<vmem>>, vector<1x2x16x16xf32>
    %55 = vector.shape_cast %54 : vector<1x2x16x16xf32> to vector<2x16x16xf32>
    %56 = vector.broadcast %53 : f32 to vector<2x16x16xf32>
    %57 = arith.mulf %56, %55 : vector<2x16x16xf32>
    %58 = arith.addf %52, %57 : vector<2x16x16xf32>
    %c3_82 = arith.constant 3 : index
    %c0_83 = arith.constant 0 : index
    %59 = memref.load %arg1[%c3_82, %c0_83] : memref<7x7xf32, #tpu.memory_space<smem>>
    %c0_84 = arith.constant 0 : index
    %c0_85 = arith.constant 0 : index
    %c3_86 = arith.constant 3 : index
    %c0_87 = arith.constant 0 : index
    %60 = vector.load %arg4[%c0_84, %c0_85, %c3_86, %c0_87] : memref<7x2x22x16xf32, #tpu.memory_space<vmem>>, vector<1x2x16x16xf32>
    %61 = vector.shape_cast %60 : vector<1x2x16x16xf32> to vector<2x16x16xf32>
    %62 = vector.broadcast %59 : f32 to vector<2x16x16xf32>
    %63 = arith.mulf %62, %61 : vector<2x16x16xf32>
    %64 = arith.addf %58, %63 : vector<2x16x16xf32>
    %c4_88 = arith.constant 4 : index
    %c0_89 = arith.constant 0 : index
    %65 = memref.load %arg1[%c4_88, %c0_89] : memref<7x7xf32, #tpu.memory_space<smem>>
    %c0_90 = arith.constant 0 : index
    %c0_91 = arith.constant 0 : index
    %c4_92 = arith.constant 4 : index
    %c0_93 = arith.constant 0 : index
    %66 = vector.load %arg4[%c0_90, %c0_91, %c4_92, %c0_93] : memref<7x2x22x16xf32, #tpu.memory_space<vmem>>, vector<1x2x16x16xf32>
    %67 = vector.shape_cast %66 : vector<1x2x16x16xf32> to vector<2x16x16xf32>
    %68 = vector.broadcast %65 : f32 to vector<2x16x16xf32>
    %69 = arith.mulf %68, %67 : vector<2x16x16xf32>
    %70 = arith.addf %64, %69 : vector<2x16x16xf32>
    %c5_94 = arith.constant 5 : index
    %c0_95 = arith.constant 0 : index
    %71 = memref.load %arg1[%c5_94, %c0_95] : memref<7x7xf32, #tpu.memory_space<smem>>
    %c0_96 = arith.constant 0 : index
    %c0_97 = arith.constant 0 : index
    %c5_98 = arith.constant 5 : index
    %c0_99 = arith.constant 0 : index
    %72 = vector.load %arg4[%c0_96, %c0_97, %c5_98, %c0_99] : memref<7x2x22x16xf32, #tpu.memory_space<vmem>>, vector<1x2x16x16xf32>
    %73 = vector.shape_cast %72 : vector<1x2x16x16xf32> to vector<2x16x16xf32>
    %74 = vector.broadcast %71 : f32 to vector<2x16x16xf32>
    %75 = arith.mulf %74, %73 : vector<2x16x16xf32>
    %76 = arith.addf %70, %75 : vector<2x16x16xf32>
    %c6_100 = arith.constant 6 : index
    %c0_101 = arith.constant 0 : index
    %77 = memref.load %arg1[%c6_100, %c0_101] : memref<7x7xf32, #tpu.memory_space<smem>>
    %c0_102 = arith.constant 0 : index
    %c0_103 = arith.constant 0 : index
    %c6_104 = arith.constant 6 : index
    %c0_105 = arith.constant 0 : index
    %78 = vector.load %arg4[%c0_102, %c0_103, %c6_104, %c0_105] : memref<7x2x22x16xf32, #tpu.memory_space<vmem>>, vector<1x2x16x16xf32>
    %79 = vector.shape_cast %78 : vector<1x2x16x16xf32> to vector<2x16x16xf32>
    %80 = vector.broadcast %77 : f32 to vector<2x16x16xf32>
    %81 = arith.mulf %80, %79 : vector<2x16x16xf32>
    %82 = arith.addf %76, %81 : vector<2x16x16xf32>
    %c0_106 = arith.constant 0 : index
    %c1_107 = arith.constant 1 : index
    %83 = memref.load %arg1[%c0_106, %c1_107] : memref<7x7xf32, #tpu.memory_space<smem>>
    %c1_108 = arith.constant 1 : index
    %c0_109 = arith.constant 0 : index
    %c0_110 = arith.constant 0 : index
    %c0_111 = arith.constant 0 : index
    %84 = vector.load %arg4[%c1_108, %c0_109, %c0_110, %c0_111] : memref<7x2x22x16xf32, #tpu.memory_space<vmem>>, vector<1x2x16x16xf32>
    %85 = vector.shape_cast %84 : vector<1x2x16x16xf32> to vector<2x16x16xf32>
    %86 = vector.broadcast %83 : f32 to vector<2x16x16xf32>
    %87 = arith.mulf %86, %85 : vector<2x16x16xf32>
    %c1_112 = arith.constant 1 : index
    %c1_113 = arith.constant 1 : index
    %88 = memref.load %arg1[%c1_112, %c1_113] : memref<7x7xf32, #tpu.memory_space<smem>>
    %c1_114 = arith.constant 1 : index
    %c0_115 = arith.constant 0 : index
    %c1_116 = arith.constant 1 : index
    %c0_117 = arith.constant 0 : index
    %89 = vector.load %arg4[%c1_114, %c0_115, %c1_116, %c0_117] : memref<7x2x22x16xf32, #tpu.memory_space<vmem>>, vector<1x2x16x16xf32>
    %90 = vector.shape_cast %89 : vector<1x2x16x16xf32> to vector<2x16x16xf32>
    %91 = vector.broadcast %88 : f32 to vector<2x16x16xf32>
    %92 = arith.mulf %91, %90 : vector<2x16x16xf32>
    %93 = arith.addf %87, %92 : vector<2x16x16xf32>
    %c2_118 = arith.constant 2 : index
    %c1_119 = arith.constant 1 : index
    %94 = memref.load %arg1[%c2_118, %c1_119] : memref<7x7xf32, #tpu.memory_space<smem>>
    %c1_120 = arith.constant 1 : index
    %c0_121 = arith.constant 0 : index
    %c2_122 = arith.constant 2 : index
    %c0_123 = arith.constant 0 : index
    %95 = vector.load %arg4[%c1_120, %c0_121, %c2_122, %c0_123] : memref<7x2x22x16xf32, #tpu.memory_space<vmem>>, vector<1x2x16x16xf32>
    %96 = vector.shape_cast %95 : vector<1x2x16x16xf32> to vector<2x16x16xf32>
    %97 = vector.broadcast %94 : f32 to vector<2x16x16xf32>
    %98 = arith.mulf %97, %96 : vector<2x16x16xf32>
    %99 = arith.addf %93, %98 : vector<2x16x16xf32>
    %c3_124 = arith.constant 3 : index
    %c1_125 = arith.constant 1 : index
    %100 = memref.load %arg1[%c3_124, %c1_125] : memref<7x7xf32, #tpu.memory_space<smem>>
    %c1_126 = arith.constant 1 : index
    %c0_127 = arith.constant 0 : index
    %c3_128 = arith.constant 3 : index
    %c0_129 = arith.constant 0 : index
    %101 = vector.load %arg4[%c1_126, %c0_127, %c3_128, %c0_129] : memref<7x2x22x16xf32, #tpu.memory_space<vmem>>, vector<1x2x16x16xf32>
    %102 = vector.shape_cast %101 : vector<1x2x16x16xf32> to vector<2x16x16xf32>
    %103 = vector.broadcast %100 : f32 to vector<2x16x16xf32>
    %104 = arith.mulf %103, %102 : vector<2x16x16xf32>
    %105 = arith.addf %99, %104 : vector<2x16x16xf32>
    %c4_130 = arith.constant 4 : index
    %c1_131 = arith.constant 1 : index
    %106 = memref.load %arg1[%c4_130, %c1_131] : memref<7x7xf32, #tpu.memory_space<smem>>
    %c1_132 = arith.constant 1 : index
    %c0_133 = arith.constant 0 : index
    %c4_134 = arith.constant 4 : index
    %c0_135 = arith.constant 0 : index
    %107 = vector.load %arg4[%c1_132, %c0_133, %c4_134, %c0_135] : memref<7x2x22x16xf32, #tpu.memory_space<vmem>>, vector<1x2x16x16xf32>
    %108 = vector.shape_cast %107 : vector<1x2x16x16xf32> to vector<2x16x16xf32>
    %109 = vector.broadcast %106 : f32 to vector<2x16x16xf32>
    %110 = arith.mulf %109, %108 : vector<2x16x16xf32>
    %111 = arith.addf %105, %110 : vector<2x16x16xf32>
    %c5_136 = arith.constant 5 : index
    %c1_137 = arith.constant 1 : index
    %112 = memref.load %arg1[%c5_136, %c1_137] : memref<7x7xf32, #tpu.memory_space<smem>>
    %c1_138 = arith.constant 1 : index
    %c0_139 = arith.constant 0 : index
    %c5_140 = arith.constant 5 : index
    %c0_141 = arith.constant 0 : index
    %113 = vector.load %arg4[%c1_138, %c0_139, %c5_140, %c0_141] : memref<7x2x22x16xf32, #tpu.memory_space<vmem>>, vector<1x2x16x16xf32>
    %114 = vector.shape_cast %113 : vector<1x2x16x16xf32> to vector<2x16x16xf32>
    %115 = vector.broadcast %112 : f32 to vector<2x16x16xf32>
    %116 = arith.mulf %115, %114 : vector<2x16x16xf32>
    %117 = arith.addf %111, %116 : vector<2x16x16xf32>
    %c6_142 = arith.constant 6 : index
    %c1_143 = arith.constant 1 : index
    %118 = memref.load %arg1[%c6_142, %c1_143] : memref<7x7xf32, #tpu.memory_space<smem>>
    %c1_144 = arith.constant 1 : index
    %c0_145 = arith.constant 0 : index
    %c6_146 = arith.constant 6 : index
    %c0_147 = arith.constant 0 : index
    %119 = vector.load %arg4[%c1_144, %c0_145, %c6_146, %c0_147] : memref<7x2x22x16xf32, #tpu.memory_space<vmem>>, vector<1x2x16x16xf32>
    %120 = vector.shape_cast %119 : vector<1x2x16x16xf32> to vector<2x16x16xf32>
    %121 = vector.broadcast %118 : f32 to vector<2x16x16xf32>
    %122 = arith.mulf %121, %120 : vector<2x16x16xf32>
    %123 = arith.addf %117, %122 : vector<2x16x16xf32>
    %c0_148 = arith.constant 0 : index
    %c2_149 = arith.constant 2 : index
    %124 = memref.load %arg1[%c0_148, %c2_149] : memref<7x7xf32, #tpu.memory_space<smem>>
    %c2_150 = arith.constant 2 : index
    %c0_151 = arith.constant 0 : index
    %c0_152 = arith.constant 0 : index
    %c0_153 = arith.constant 0 : index
    %125 = vector.load %arg4[%c2_150, %c0_151, %c0_152, %c0_153] : memref<7x2x22x16xf32, #tpu.memory_space<vmem>>, vector<1x2x16x16xf32>
    %126 = vector.shape_cast %125 : vector<1x2x16x16xf32> to vector<2x16x16xf32>
    %127 = vector.broadcast %124 : f32 to vector<2x16x16xf32>
    %128 = arith.mulf %127, %126 : vector<2x16x16xf32>
    %c1_154 = arith.constant 1 : index
    %c2_155 = arith.constant 2 : index
    %129 = memref.load %arg1[%c1_154, %c2_155] : memref<7x7xf32, #tpu.memory_space<smem>>
    %c2_156 = arith.constant 2 : index
    %c0_157 = arith.constant 0 : index
    %c1_158 = arith.constant 1 : index
    %c0_159 = arith.constant 0 : index
    %130 = vector.load %arg4[%c2_156, %c0_157, %c1_158, %c0_159] : memref<7x2x22x16xf32, #tpu.memory_space<vmem>>, vector<1x2x16x16xf32>
    %131 = vector.shape_cast %130 : vector<1x2x16x16xf32> to vector<2x16x16xf32>
    %132 = vector.broadcast %129 : f32 to vector<2x16x16xf32>
    %133 = arith.mulf %132, %131 : vector<2x16x16xf32>
    %134 = arith.addf %128, %133 : vector<2x16x16xf32>
    %c2_160 = arith.constant 2 : index
    %c2_161 = arith.constant 2 : index
    %135 = memref.load %arg1[%c2_160, %c2_161] : memref<7x7xf32, #tpu.memory_space<smem>>
    %c2_162 = arith.constant 2 : index
    %c0_163 = arith.constant 0 : index
    %c2_164 = arith.constant 2 : index
    %c0_165 = arith.constant 0 : index
    %136 = vector.load %arg4[%c2_162, %c0_163, %c2_164, %c0_165] : memref<7x2x22x16xf32, #tpu.memory_space<vmem>>, vector<1x2x16x16xf32>
    %137 = vector.shape_cast %136 : vector<1x2x16x16xf32> to vector<2x16x16xf32>
    %138 = vector.broadcast %135 : f32 to vector<2x16x16xf32>
    %139 = arith.mulf %138, %137 : vector<2x16x16xf32>
    %140 = arith.addf %134, %139 : vector<2x16x16xf32>
    %c3_166 = arith.constant 3 : index
    %c2_167 = arith.constant 2 : index
    %141 = memref.load %arg1[%c3_166, %c2_167] : memref<7x7xf32, #tpu.memory_space<smem>>
    %c2_168 = arith.constant 2 : index
    %c0_169 = arith.constant 0 : index
    %c3_170 = arith.constant 3 : index
    %c0_171 = arith.constant 0 : index
    %142 = vector.load %arg4[%c2_168, %c0_169, %c3_170, %c0_171] : memref<7x2x22x16xf32, #tpu.memory_space<vmem>>, vector<1x2x16x16xf32>
    %143 = vector.shape_cast %142 : vector<1x2x16x16xf32> to vector<2x16x16xf32>
    %144 = vector.broadcast %141 : f32 to vector<2x16x16xf32>
    %145 = arith.mulf %144, %143 : vector<2x16x16xf32>
    %146 = arith.addf %140, %145 : vector<2x16x16xf32>
    %c4_172 = arith.constant 4 : index
    %c2_173 = arith.constant 2 : index
    %147 = memref.load %arg1[%c4_172, %c2_173] : memref<7x7xf32, #tpu.memory_space<smem>>
    %c2_174 = arith.constant 2 : index
    %c0_175 = arith.constant 0 : index
    %c4_176 = arith.constant 4 : index
    %c0_177 = arith.constant 0 : index
    %148 = vector.load %arg4[%c2_174, %c0_175, %c4_176, %c0_177] : memref<7x2x22x16xf32, #tpu.memory_space<vmem>>, vector<1x2x16x16xf32>
    %149 = vector.shape_cast %148 : vector<1x2x16x16xf32> to vector<2x16x16xf32>
    %150 = vector.broadcast %147 : f32 to vector<2x16x16xf32>
    %151 = arith.mulf %150, %149 : vector<2x16x16xf32>
    %152 = arith.addf %146, %151 : vector<2x16x16xf32>
    %c5_178 = arith.constant 5 : index
    %c2_179 = arith.constant 2 : index
    %153 = memref.load %arg1[%c5_178, %c2_179] : memref<7x7xf32, #tpu.memory_space<smem>>
    %c2_180 = arith.constant 2 : index
    %c0_181 = arith.constant 0 : index
    %c5_182 = arith.constant 5 : index
    %c0_183 = arith.constant 0 : index
    %154 = vector.load %arg4[%c2_180, %c0_181, %c5_182, %c0_183] : memref<7x2x22x16xf32, #tpu.memory_space<vmem>>, vector<1x2x16x16xf32>
    %155 = vector.shape_cast %154 : vector<1x2x16x16xf32> to vector<2x16x16xf32>
    %156 = vector.broadcast %153 : f32 to vector<2x16x16xf32>
    %157 = arith.mulf %156, %155 : vector<2x16x16xf32>
    %158 = arith.addf %152, %157 : vector<2x16x16xf32>
    %c6_184 = arith.constant 6 : index
    %c2_185 = arith.constant 2 : index
    %159 = memref.load %arg1[%c6_184, %c2_185] : memref<7x7xf32, #tpu.memory_space<smem>>
    %c2_186 = arith.constant 2 : index
    %c0_187 = arith.constant 0 : index
    %c6_188 = arith.constant 6 : index
    %c0_189 = arith.constant 0 : index
    %160 = vector.load %arg4[%c2_186, %c0_187, %c6_188, %c0_189] : memref<7x2x22x16xf32, #tpu.memory_space<vmem>>, vector<1x2x16x16xf32>
    %161 = vector.shape_cast %160 : vector<1x2x16x16xf32> to vector<2x16x16xf32>
    %162 = vector.broadcast %159 : f32 to vector<2x16x16xf32>
    %163 = arith.mulf %162, %161 : vector<2x16x16xf32>
    %164 = arith.addf %158, %163 : vector<2x16x16xf32>
    %c0_190 = arith.constant 0 : index
    %c3_191 = arith.constant 3 : index
    %165 = memref.load %arg1[%c0_190, %c3_191] : memref<7x7xf32, #tpu.memory_space<smem>>
    %c3_192 = arith.constant 3 : index
    %c0_193 = arith.constant 0 : index
    %c0_194 = arith.constant 0 : index
    %c0_195 = arith.constant 0 : index
    %166 = vector.load %arg4[%c3_192, %c0_193, %c0_194, %c0_195] : memref<7x2x22x16xf32, #tpu.memory_space<vmem>>, vector<1x2x16x16xf32>
    %167 = vector.shape_cast %166 : vector<1x2x16x16xf32> to vector<2x16x16xf32>
    %168 = vector.broadcast %165 : f32 to vector<2x16x16xf32>
    %169 = arith.mulf %168, %167 : vector<2x16x16xf32>
    %c1_196 = arith.constant 1 : index
    %c3_197 = arith.constant 3 : index
    %170 = memref.load %arg1[%c1_196, %c3_197] : memref<7x7xf32, #tpu.memory_space<smem>>
    %c3_198 = arith.constant 3 : index
    %c0_199 = arith.constant 0 : index
    %c1_200 = arith.constant 1 : index
    %c0_201 = arith.constant 0 : index
    %171 = vector.load %arg4[%c3_198, %c0_199, %c1_200, %c0_201] : memref<7x2x22x16xf32, #tpu.memory_space<vmem>>, vector<1x2x16x16xf32>
    %172 = vector.shape_cast %171 : vector<1x2x16x16xf32> to vector<2x16x16xf32>
    %173 = vector.broadcast %170 : f32 to vector<2x16x16xf32>
    %174 = arith.mulf %173, %172 : vector<2x16x16xf32>
    %175 = arith.addf %169, %174 : vector<2x16x16xf32>
    %c2_202 = arith.constant 2 : index
    %c3_203 = arith.constant 3 : index
    %176 = memref.load %arg1[%c2_202, %c3_203] : memref<7x7xf32, #tpu.memory_space<smem>>
    %c3_204 = arith.constant 3 : index
    %c0_205 = arith.constant 0 : index
    %c2_206 = arith.constant 2 : index
    %c0_207 = arith.constant 0 : index
    %177 = vector.load %arg4[%c3_204, %c0_205, %c2_206, %c0_207] : memref<7x2x22x16xf32, #tpu.memory_space<vmem>>, vector<1x2x16x16xf32>
    %178 = vector.shape_cast %177 : vector<1x2x16x16xf32> to vector<2x16x16xf32>
    %179 = vector.broadcast %176 : f32 to vector<2x16x16xf32>
    %180 = arith.mulf %179, %178 : vector<2x16x16xf32>
    %181 = arith.addf %175, %180 : vector<2x16x16xf32>
    %c3_208 = arith.constant 3 : index
    %c3_209 = arith.constant 3 : index
    %182 = memref.load %arg1[%c3_208, %c3_209] : memref<7x7xf32, #tpu.memory_space<smem>>
    %c3_210 = arith.constant 3 : index
    %c0_211 = arith.constant 0 : index
    %c3_212 = arith.constant 3 : index
    %c0_213 = arith.constant 0 : index
    %183 = vector.load %arg4[%c3_210, %c0_211, %c3_212, %c0_213] : memref<7x2x22x16xf32, #tpu.memory_space<vmem>>, vector<1x2x16x16xf32>
    %184 = vector.shape_cast %183 : vector<1x2x16x16xf32> to vector<2x16x16xf32>
    %185 = vector.broadcast %182 : f32 to vector<2x16x16xf32>
    %186 = arith.mulf %185, %184 : vector<2x16x16xf32>
    %187 = arith.addf %181, %186 : vector<2x16x16xf32>
    %c4_214 = arith.constant 4 : index
    %c3_215 = arith.constant 3 : index
    %188 = memref.load %arg1[%c4_214, %c3_215] : memref<7x7xf32, #tpu.memory_space<smem>>
    %c3_216 = arith.constant 3 : index
    %c0_217 = arith.constant 0 : index
    %c4_218 = arith.constant 4 : index
    %c0_219 = arith.constant 0 : index
    %189 = vector.load %arg4[%c3_216, %c0_217, %c4_218, %c0_219] : memref<7x2x22x16xf32, #tpu.memory_space<vmem>>, vector<1x2x16x16xf32>
    %190 = vector.shape_cast %189 : vector<1x2x16x16xf32> to vector<2x16x16xf32>
    %191 = vector.broadcast %188 : f32 to vector<2x16x16xf32>
    %192 = arith.mulf %191, %190 : vector<2x16x16xf32>
    %193 = arith.addf %187, %192 : vector<2x16x16xf32>
    %c5_220 = arith.constant 5 : index
    %c3_221 = arith.constant 3 : index
    %194 = memref.load %arg1[%c5_220, %c3_221] : memref<7x7xf32, #tpu.memory_space<smem>>
    %c3_222 = arith.constant 3 : index
    %c0_223 = arith.constant 0 : index
    %c5_224 = arith.constant 5 : index
    %c0_225 = arith.constant 0 : index
    %195 = vector.load %arg4[%c3_222, %c0_223, %c5_224, %c0_225] : memref<7x2x22x16xf32, #tpu.memory_space<vmem>>, vector<1x2x16x16xf32>
    %196 = vector.shape_cast %195 : vector<1x2x16x16xf32> to vector<2x16x16xf32>
    %197 = vector.broadcast %194 : f32 to vector<2x16x16xf32>
    %198 = arith.mulf %197, %196 : vector<2x16x16xf32>
    %199 = arith.addf %193, %198 : vector<2x16x16xf32>
    %c6_226 = arith.constant 6 : index
    %c3_227 = arith.constant 3 : index
    %200 = memref.load %arg1[%c6_226, %c3_227] : memref<7x7xf32, #tpu.memory_space<smem>>
    %c3_228 = arith.constant 3 : index
    %c0_229 = arith.constant 0 : index
    %c6_230 = arith.constant 6 : index
    %c0_231 = arith.constant 0 : index
    %201 = vector.load %arg4[%c3_228, %c0_229, %c6_230, %c0_231] : memref<7x2x22x16xf32, #tpu.memory_space<vmem>>, vector<1x2x16x16xf32>
    %202 = vector.shape_cast %201 : vector<1x2x16x16xf32> to vector<2x16x16xf32>
    %203 = vector.broadcast %200 : f32 to vector<2x16x16xf32>
    %204 = arith.mulf %203, %202 : vector<2x16x16xf32>
    %205 = arith.addf %199, %204 : vector<2x16x16xf32>
    %c0_232 = arith.constant 0 : index
    %c4_233 = arith.constant 4 : index
    %206 = memref.load %arg1[%c0_232, %c4_233] : memref<7x7xf32, #tpu.memory_space<smem>>
    %c4_234 = arith.constant 4 : index
    %c0_235 = arith.constant 0 : index
    %c0_236 = arith.constant 0 : index
    %c0_237 = arith.constant 0 : index
    %207 = vector.load %arg4[%c4_234, %c0_235, %c0_236, %c0_237] : memref<7x2x22x16xf32, #tpu.memory_space<vmem>>, vector<1x2x16x16xf32>
    %208 = vector.shape_cast %207 : vector<1x2x16x16xf32> to vector<2x16x16xf32>
    %209 = vector.broadcast %206 : f32 to vector<2x16x16xf32>
    %210 = arith.mulf %209, %208 : vector<2x16x16xf32>
    %c1_238 = arith.constant 1 : index
    %c4_239 = arith.constant 4 : index
    %211 = memref.load %arg1[%c1_238, %c4_239] : memref<7x7xf32, #tpu.memory_space<smem>>
    %c4_240 = arith.constant 4 : index
    %c0_241 = arith.constant 0 : index
    %c1_242 = arith.constant 1 : index
    %c0_243 = arith.constant 0 : index
    %212 = vector.load %arg4[%c4_240, %c0_241, %c1_242, %c0_243] : memref<7x2x22x16xf32, #tpu.memory_space<vmem>>, vector<1x2x16x16xf32>
    %213 = vector.shape_cast %212 : vector<1x2x16x16xf32> to vector<2x16x16xf32>
    %214 = vector.broadcast %211 : f32 to vector<2x16x16xf32>
    %215 = arith.mulf %214, %213 : vector<2x16x16xf32>
    %216 = arith.addf %210, %215 : vector<2x16x16xf32>
    %c2_244 = arith.constant 2 : index
    %c4_245 = arith.constant 4 : index
    %217 = memref.load %arg1[%c2_244, %c4_245] : memref<7x7xf32, #tpu.memory_space<smem>>
    %c4_246 = arith.constant 4 : index
    %c0_247 = arith.constant 0 : index
    %c2_248 = arith.constant 2 : index
    %c0_249 = arith.constant 0 : index
    %218 = vector.load %arg4[%c4_246, %c0_247, %c2_248, %c0_249] : memref<7x2x22x16xf32, #tpu.memory_space<vmem>>, vector<1x2x16x16xf32>
    %219 = vector.shape_cast %218 : vector<1x2x16x16xf32> to vector<2x16x16xf32>
    %220 = vector.broadcast %217 : f32 to vector<2x16x16xf32>
    %221 = arith.mulf %220, %219 : vector<2x16x16xf32>
    %222 = arith.addf %216, %221 : vector<2x16x16xf32>
    %c3_250 = arith.constant 3 : index
    %c4_251 = arith.constant 4 : index
    %223 = memref.load %arg1[%c3_250, %c4_251] : memref<7x7xf32, #tpu.memory_space<smem>>
    %c4_252 = arith.constant 4 : index
    %c0_253 = arith.constant 0 : index
    %c3_254 = arith.constant 3 : index
    %c0_255 = arith.constant 0 : index
    %224 = vector.load %arg4[%c4_252, %c0_253, %c3_254, %c0_255] : memref<7x2x22x16xf32, #tpu.memory_space<vmem>>, vector<1x2x16x16xf32>
    %225 = vector.shape_cast %224 : vector<1x2x16x16xf32> to vector<2x16x16xf32>
    %226 = vector.broadcast %223 : f32 to vector<2x16x16xf32>
    %227 = arith.mulf %226, %225 : vector<2x16x16xf32>
    %228 = arith.addf %222, %227 : vector<2x16x16xf32>
    %c4_256 = arith.constant 4 : index
    %c4_257 = arith.constant 4 : index
    %229 = memref.load %arg1[%c4_256, %c4_257] : memref<7x7xf32, #tpu.memory_space<smem>>
    %c4_258 = arith.constant 4 : index
    %c0_259 = arith.constant 0 : index
    %c4_260 = arith.constant 4 : index
    %c0_261 = arith.constant 0 : index
    %230 = vector.load %arg4[%c4_258, %c0_259, %c4_260, %c0_261] : memref<7x2x22x16xf32, #tpu.memory_space<vmem>>, vector<1x2x16x16xf32>
    %231 = vector.shape_cast %230 : vector<1x2x16x16xf32> to vector<2x16x16xf32>
    %232 = vector.broadcast %229 : f32 to vector<2x16x16xf32>
    %233 = arith.mulf %232, %231 : vector<2x16x16xf32>
    %234 = arith.addf %228, %233 : vector<2x16x16xf32>
    %c5_262 = arith.constant 5 : index
    %c4_263 = arith.constant 4 : index
    %235 = memref.load %arg1[%c5_262, %c4_263] : memref<7x7xf32, #tpu.memory_space<smem>>
    %c4_264 = arith.constant 4 : index
    %c0_265 = arith.constant 0 : index
    %c5_266 = arith.constant 5 : index
    %c0_267 = arith.constant 0 : index
    %236 = vector.load %arg4[%c4_264, %c0_265, %c5_266, %c0_267] : memref<7x2x22x16xf32, #tpu.memory_space<vmem>>, vector<1x2x16x16xf32>
    %237 = vector.shape_cast %236 : vector<1x2x16x16xf32> to vector<2x16x16xf32>
    %238 = vector.broadcast %235 : f32 to vector<2x16x16xf32>
    %239 = arith.mulf %238, %237 : vector<2x16x16xf32>
    %240 = arith.addf %234, %239 : vector<2x16x16xf32>
    %c6_268 = arith.constant 6 : index
    %c4_269 = arith.constant 4 : index
    %241 = memref.load %arg1[%c6_268, %c4_269] : memref<7x7xf32, #tpu.memory_space<smem>>
    %c4_270 = arith.constant 4 : index
    %c0_271 = arith.constant 0 : index
    %c6_272 = arith.constant 6 : index
    %c0_273 = arith.constant 0 : index
    %242 = vector.load %arg4[%c4_270, %c0_271, %c6_272, %c0_273] : memref<7x2x22x16xf32, #tpu.memory_space<vmem>>, vector<1x2x16x16xf32>
    %243 = vector.shape_cast %242 : vector<1x2x16x16xf32> to vector<2x16x16xf32>
    %244 = vector.broadcast %241 : f32 to vector<2x16x16xf32>
    %245 = arith.mulf %244, %243 : vector<2x16x16xf32>
    %246 = arith.addf %240, %245 : vector<2x16x16xf32>
    %c0_274 = arith.constant 0 : index
    %c5_275 = arith.constant 5 : index
    %247 = memref.load %arg1[%c0_274, %c5_275] : memref<7x7xf32, #tpu.memory_space<smem>>
    %c5_276 = arith.constant 5 : index
    %c0_277 = arith.constant 0 : index
    %c0_278 = arith.constant 0 : index
    %c0_279 = arith.constant 0 : index
    %248 = vector.load %arg4[%c5_276, %c0_277, %c0_278, %c0_279] : memref<7x2x22x16xf32, #tpu.memory_space<vmem>>, vector<1x2x16x16xf32>
    %249 = vector.shape_cast %248 : vector<1x2x16x16xf32> to vector<2x16x16xf32>
    %250 = vector.broadcast %247 : f32 to vector<2x16x16xf32>
    %251 = arith.mulf %250, %249 : vector<2x16x16xf32>
    %c1_280 = arith.constant 1 : index
    %c5_281 = arith.constant 5 : index
    %252 = memref.load %arg1[%c1_280, %c5_281] : memref<7x7xf32, #tpu.memory_space<smem>>
    %c5_282 = arith.constant 5 : index
    %c0_283 = arith.constant 0 : index
    %c1_284 = arith.constant 1 : index
    %c0_285 = arith.constant 0 : index
    %253 = vector.load %arg4[%c5_282, %c0_283, %c1_284, %c0_285] : memref<7x2x22x16xf32, #tpu.memory_space<vmem>>, vector<1x2x16x16xf32>
    %254 = vector.shape_cast %253 : vector<1x2x16x16xf32> to vector<2x16x16xf32>
    %255 = vector.broadcast %252 : f32 to vector<2x16x16xf32>
    %256 = arith.mulf %255, %254 : vector<2x16x16xf32>
    %257 = arith.addf %251, %256 : vector<2x16x16xf32>
    %c2_286 = arith.constant 2 : index
    %c5_287 = arith.constant 5 : index
    %258 = memref.load %arg1[%c2_286, %c5_287] : memref<7x7xf32, #tpu.memory_space<smem>>
    %c5_288 = arith.constant 5 : index
    %c0_289 = arith.constant 0 : index
    %c2_290 = arith.constant 2 : index
    %c0_291 = arith.constant 0 : index
    %259 = vector.load %arg4[%c5_288, %c0_289, %c2_290, %c0_291] : memref<7x2x22x16xf32, #tpu.memory_space<vmem>>, vector<1x2x16x16xf32>
    %260 = vector.shape_cast %259 : vector<1x2x16x16xf32> to vector<2x16x16xf32>
    %261 = vector.broadcast %258 : f32 to vector<2x16x16xf32>
    %262 = arith.mulf %261, %260 : vector<2x16x16xf32>
    %263 = arith.addf %257, %262 : vector<2x16x16xf32>
    %c3_292 = arith.constant 3 : index
    %c5_293 = arith.constant 5 : index
    %264 = memref.load %arg1[%c3_292, %c5_293] : memref<7x7xf32, #tpu.memory_space<smem>>
    %c5_294 = arith.constant 5 : index
    %c0_295 = arith.constant 0 : index
    %c3_296 = arith.constant 3 : index
    %c0_297 = arith.constant 0 : index
    %265 = vector.load %arg4[%c5_294, %c0_295, %c3_296, %c0_297] : memref<7x2x22x16xf32, #tpu.memory_space<vmem>>, vector<1x2x16x16xf32>
    %266 = vector.shape_cast %265 : vector<1x2x16x16xf32> to vector<2x16x16xf32>
    %267 = vector.broadcast %264 : f32 to vector<2x16x16xf32>
    %268 = arith.mulf %267, %266 : vector<2x16x16xf32>
    %269 = arith.addf %263, %268 : vector<2x16x16xf32>
    %c4_298 = arith.constant 4 : index
    %c5_299 = arith.constant 5 : index
    %270 = memref.load %arg1[%c4_298, %c5_299] : memref<7x7xf32, #tpu.memory_space<smem>>
    %c5_300 = arith.constant 5 : index
    %c0_301 = arith.constant 0 : index
    %c4_302 = arith.constant 4 : index
    %c0_303 = arith.constant 0 : index
    %271 = vector.load %arg4[%c5_300, %c0_301, %c4_302, %c0_303] : memref<7x2x22x16xf32, #tpu.memory_space<vmem>>, vector<1x2x16x16xf32>
    %272 = vector.shape_cast %271 : vector<1x2x16x16xf32> to vector<2x16x16xf32>
    %273 = vector.broadcast %270 : f32 to vector<2x16x16xf32>
    %274 = arith.mulf %273, %272 : vector<2x16x16xf32>
    %275 = arith.addf %269, %274 : vector<2x16x16xf32>
    %c5_304 = arith.constant 5 : index
    %c5_305 = arith.constant 5 : index
    %276 = memref.load %arg1[%c5_304, %c5_305] : memref<7x7xf32, #tpu.memory_space<smem>>
    %c5_306 = arith.constant 5 : index
    %c0_307 = arith.constant 0 : index
    %c5_308 = arith.constant 5 : index
    %c0_309 = arith.constant 0 : index
    %277 = vector.load %arg4[%c5_306, %c0_307, %c5_308, %c0_309] : memref<7x2x22x16xf32, #tpu.memory_space<vmem>>, vector<1x2x16x16xf32>
    %278 = vector.shape_cast %277 : vector<1x2x16x16xf32> to vector<2x16x16xf32>
    %279 = vector.broadcast %276 : f32 to vector<2x16x16xf32>
    %280 = arith.mulf %279, %278 : vector<2x16x16xf32>
    %281 = arith.addf %275, %280 : vector<2x16x16xf32>
    %c6_310 = arith.constant 6 : index
    %c5_311 = arith.constant 5 : index
    %282 = memref.load %arg1[%c6_310, %c5_311] : memref<7x7xf32, #tpu.memory_space<smem>>
    %c5_312 = arith.constant 5 : index
    %c0_313 = arith.constant 0 : index
    %c6_314 = arith.constant 6 : index
    %c0_315 = arith.constant 0 : index
    %283 = vector.load %arg4[%c5_312, %c0_313, %c6_314, %c0_315] : memref<7x2x22x16xf32, #tpu.memory_space<vmem>>, vector<1x2x16x16xf32>
    %284 = vector.shape_cast %283 : vector<1x2x16x16xf32> to vector<2x16x16xf32>
    %285 = vector.broadcast %282 : f32 to vector<2x16x16xf32>
    %286 = arith.mulf %285, %284 : vector<2x16x16xf32>
    %287 = arith.addf %281, %286 : vector<2x16x16xf32>
    %c0_316 = arith.constant 0 : index
    %c6_317 = arith.constant 6 : index
    %288 = memref.load %arg1[%c0_316, %c6_317] : memref<7x7xf32, #tpu.memory_space<smem>>
    %c6_318 = arith.constant 6 : index
    %c0_319 = arith.constant 0 : index
    %c0_320 = arith.constant 0 : index
    %c0_321 = arith.constant 0 : index
    %289 = vector.load %arg4[%c6_318, %c0_319, %c0_320, %c0_321] : memref<7x2x22x16xf32, #tpu.memory_space<vmem>>, vector<1x2x16x16xf32>
    %290 = vector.shape_cast %289 : vector<1x2x16x16xf32> to vector<2x16x16xf32>
    %291 = vector.broadcast %288 : f32 to vector<2x16x16xf32>
    %292 = arith.mulf %291, %290 : vector<2x16x16xf32>
    %c1_322 = arith.constant 1 : index
    %c6_323 = arith.constant 6 : index
    %293 = memref.load %arg1[%c1_322, %c6_323] : memref<7x7xf32, #tpu.memory_space<smem>>
    %c6_324 = arith.constant 6 : index
    %c0_325 = arith.constant 0 : index
    %c1_326 = arith.constant 1 : index
    %c0_327 = arith.constant 0 : index
    %294 = vector.load %arg4[%c6_324, %c0_325, %c1_326, %c0_327] : memref<7x2x22x16xf32, #tpu.memory_space<vmem>>, vector<1x2x16x16xf32>
    %295 = vector.shape_cast %294 : vector<1x2x16x16xf32> to vector<2x16x16xf32>
    %296 = vector.broadcast %293 : f32 to vector<2x16x16xf32>
    %297 = arith.mulf %296, %295 : vector<2x16x16xf32>
    %298 = arith.addf %292, %297 : vector<2x16x16xf32>
    %c2_328 = arith.constant 2 : index
    %c6_329 = arith.constant 6 : index
    %299 = memref.load %arg1[%c2_328, %c6_329] : memref<7x7xf32, #tpu.memory_space<smem>>
    %c6_330 = arith.constant 6 : index
    %c0_331 = arith.constant 0 : index
    %c2_332 = arith.constant 2 : index
    %c0_333 = arith.constant 0 : index
    %300 = vector.load %arg4[%c6_330, %c0_331, %c2_332, %c0_333] : memref<7x2x22x16xf32, #tpu.memory_space<vmem>>, vector<1x2x16x16xf32>
    %301 = vector.shape_cast %300 : vector<1x2x16x16xf32> to vector<2x16x16xf32>
    %302 = vector.broadcast %299 : f32 to vector<2x16x16xf32>
    %303 = arith.mulf %302, %301 : vector<2x16x16xf32>
    %304 = arith.addf %298, %303 : vector<2x16x16xf32>
    %c3_334 = arith.constant 3 : index
    %c6_335 = arith.constant 6 : index
    %305 = memref.load %arg1[%c3_334, %c6_335] : memref<7x7xf32, #tpu.memory_space<smem>>
    %c6_336 = arith.constant 6 : index
    %c0_337 = arith.constant 0 : index
    %c3_338 = arith.constant 3 : index
    %c0_339 = arith.constant 0 : index
    %306 = vector.load %arg4[%c6_336, %c0_337, %c3_338, %c0_339] : memref<7x2x22x16xf32, #tpu.memory_space<vmem>>, vector<1x2x16x16xf32>
    %307 = vector.shape_cast %306 : vector<1x2x16x16xf32> to vector<2x16x16xf32>
    %308 = vector.broadcast %305 : f32 to vector<2x16x16xf32>
    %309 = arith.mulf %308, %307 : vector<2x16x16xf32>
    %310 = arith.addf %304, %309 : vector<2x16x16xf32>
    %c4_340 = arith.constant 4 : index
    %c6_341 = arith.constant 6 : index
    %311 = memref.load %arg1[%c4_340, %c6_341] : memref<7x7xf32, #tpu.memory_space<smem>>
    %c6_342 = arith.constant 6 : index
    %c0_343 = arith.constant 0 : index
    %c4_344 = arith.constant 4 : index
    %c0_345 = arith.constant 0 : index
    %312 = vector.load %arg4[%c6_342, %c0_343, %c4_344, %c0_345] : memref<7x2x22x16xf32, #tpu.memory_space<vmem>>, vector<1x2x16x16xf32>
    %313 = vector.shape_cast %312 : vector<1x2x16x16xf32> to vector<2x16x16xf32>
    %314 = vector.broadcast %311 : f32 to vector<2x16x16xf32>
    %315 = arith.mulf %314, %313 : vector<2x16x16xf32>
    %316 = arith.addf %310, %315 : vector<2x16x16xf32>
    %c5_346 = arith.constant 5 : index
    %c6_347 = arith.constant 6 : index
    %317 = memref.load %arg1[%c5_346, %c6_347] : memref<7x7xf32, #tpu.memory_space<smem>>
    %c6_348 = arith.constant 6 : index
    %c0_349 = arith.constant 0 : index
    %c5_350 = arith.constant 5 : index
    %c0_351 = arith.constant 0 : index
    %318 = vector.load %arg4[%c6_348, %c0_349, %c5_350, %c0_351] : memref<7x2x22x16xf32, #tpu.memory_space<vmem>>, vector<1x2x16x16xf32>
    %319 = vector.shape_cast %318 : vector<1x2x16x16xf32> to vector<2x16x16xf32>
    %320 = vector.broadcast %317 : f32 to vector<2x16x16xf32>
    %321 = arith.mulf %320, %319 : vector<2x16x16xf32>
    %322 = arith.addf %316, %321 : vector<2x16x16xf32>
    %c6_352 = arith.constant 6 : index
    %c6_353 = arith.constant 6 : index
    %323 = memref.load %arg1[%c6_352, %c6_353] : memref<7x7xf32, #tpu.memory_space<smem>>
    %c6_354 = arith.constant 6 : index
    %c0_355 = arith.constant 0 : index
    %c6_356 = arith.constant 6 : index
    %c0_357 = arith.constant 0 : index
    %324 = vector.load %arg4[%c6_354, %c0_355, %c6_356, %c0_357] : memref<7x2x22x16xf32, #tpu.memory_space<vmem>>, vector<1x2x16x16xf32>
    %325 = vector.shape_cast %324 : vector<1x2x16x16xf32> to vector<2x16x16xf32>
    %326 = vector.broadcast %323 : f32 to vector<2x16x16xf32>
    %327 = arith.mulf %326, %325 : vector<2x16x16xf32>
    %328 = arith.addf %322, %327 : vector<2x16x16xf32>
    %329 = arith.addf %82, %123 : vector<2x16x16xf32>
    %330 = arith.addf %164, %205 : vector<2x16x16xf32>
    %331 = arith.addf %329, %330 : vector<2x16x16xf32>
    %332 = arith.addf %246, %287 : vector<2x16x16xf32>
    %333 = arith.addf %332, %328 : vector<2x16x16xf32>
    %334 = arith.addf %331, %333 : vector<2x16x16xf32>
    %cst_358 = arith.constant 0.000000e+00 : f32
    %335 = vector.broadcast %cst_358 : f32 to vector<2x16x16xf32>
    %336 = arith.subf %335, %334 : vector<2x16x16xf32>
    %337 = math.exp %336 : vector<2x16x16xf32>
    %cst_359 = arith.constant 1.000000e+00 : f32
    %338 = vector.broadcast %cst_359 : f32 to vector<2x16x16xf32>
    %339 = arith.addf %338, %337 : vector<2x16x16xf32>
    %cst_360 = arith.constant 1.000000e+00 : f32
    %340 = vector.broadcast %cst_360 : f32 to vector<2x16x16xf32>
    %341 = arith.divf %340, %339 : vector<2x16x16xf32>
    %c0_361 = arith.constant 0 : index
    %c0_362 = arith.constant 0 : index
    %c0_363 = arith.constant 0 : index
    %342 = vector.load %arg2[%c0_361, %c0_362, %c0_363] : memref<2x16x16xf32, #tpu.memory_space<vmem>>, vector<2x16x16xf32>
    tpu.vector_store %arg2[%c0_361, %c0_362, %c0_363], %341 {strides = array<i32>} : memref<2x16x16xf32, #tpu.memory_space<vmem>>, vector<2x16x16xf32>,
    return
  }
}

</mosaic_0001>

<bundles_post_ra>
// kernel: tpu_custom_call.1
= control target key start
LH: loop header
LB: loop body
LE: loop exit
PB: predicated region body
PF: predicated region fallthrough
CT: control target
= control target key end

     0   :  { %7 = vsyncpa [#allocation5], 0  ;;  %s1791_s0 = inlined_call_operand.hbm [shape: f32[2,4,16,16], index: 0, kind: input, shape index: {}]   ;;  %s1792_s1 = inlined_call_operand.hbm [shape: f32[7,7], index: 1, kind: input, shape index: {}]   ;;  %s1793_s2 = inlined_call_operand.hbm [shape: f32[2,16,16], index: 2, kind: output, shape index: {}]  }
   0x1   :  { %8 = vsyncpa [#allocation7], 0 }
   0x2   :  { %9 = vsyncpa [#allocation6], 0  ;;  %s1198_s9 = smov [#allocation4]   ;;  %s1138_s13 = scalar_lea.hbm %s1791_s0, 2048 }
   0x3   :  { %s15_s10 = sshll.u32 %s1198_s9, 4  ;;  %p1139_p0 = scmp.ne.s32.totalorder %s1791_s0, %s1138_s13  ;;  %s16_s10 = int_to_ptr.vmem [resolvable:$true] %s15_s10 }
   0x4   :  { %p1142_p1 = scmp.lt.u32.totalorder %s1138_s13, %s1791_s0 }
   0x6   :  { %p1144_p2 = pnand %p1142_p1, %p1139_p0 }
   0x8   :  { %1147 = shalt.err (!%p1144_p2)
}
   0x9   :  { %s1148_s18 = scalar_lea.vmem %s16_s10, 2048  ;;  %p1153_p4 = scmp.lt.s32.totalorder %s16_s10, %s16_s10 }
   0xa   :  { %p1149_p3 = scmp.ne.s32.totalorder %s16_s10, %s1148_s18  ;;  %p1154_p5 = scmp.lt.s32.totalorder %s1148_s18, %s1148_s18 }
   0xc   :  { %p1155_p6 = por %p1154_p5, %p1153_p4 }
   0xe   :  { %p1156_p7 = pnand %p1155_p6, %p1149_p3 }
  0x10   :  { %1159 = shalt.err (!%p1156_p7)
}
  0x11   :  { %s1794_s19 = smov 128   ;;  %s1200_s20 = smov 8  }
  0x12   :  { %21 = dma.hbm_to_vmem [thread:$0]  %s1791_s0, 2048, %s16_s10, [#allocation5], %s1794_s19, %s1794_s19, %s1200_s20  }
  0x13   :  { %s1160_s25 = scalar_lea.hbm %s1792_s1, 128 }
  0x14   :  { %p1161_p8 = scmp.ne.s32.totalorder %s1792_s1, %s1160_s25  ;;  %p1164_p9 = scmp.lt.u32.totalorder %s1160_s25, %s1792_s1 }
  0x16   :  { %p1166_p10 = pnand %p1164_p9, %p1161_p8 }
  0x18   :  { %1169 = shalt.err (!%p1166_p10)
}
  0x19   :  { %s1201_s30 = smov [#allocation8]  }
  0x1a   :  { %29 = dma.hbm_to_smem %s1792_s1, 128, %s1201_s30, [#allocation7]  }
  0x1b   :  { %1192 = dma.done.wait [#allocation5], 2048  }
  0x1c   :  { %1193 = vsyncadd [#allocation5], 4294965248 }
  0x1d   :  { %1194 = dma.done.wait [#allocation7], 128  }
  0x1e   :  { %1195 = vsyncadd [#allocation7], 4294967168 }
  0x1f   :  { %36 = sfence }
  0x20   :  { %v39_v0 = vld [vmem:[#allocation4 + $0x40] sm:$0xff]  ;;  %v44_v1 = vld [vmem:[#allocation4 + $0x50] sm:$0xff]  ;;  %vm68_vm0 = vcmask 179200   ;;  %v1202_v6 = vmov 0.0   ;;  %vm71_vm1 = vcmask 177152   ;;  %v40_v10 = vld [vmem:[#allocation4 + $0x48] sm:$0xff] }
  0x21   :  { %v53_v2 = vld [vmem:[#allocation4 + $0x60] sm:$0xff]  ;;  %v48_v3 = vmax.f32 %v39_v0, %v44_v1  ;;  %v42_v5 = vld [vmem:[#allocation4 + $0x10] sm:$0xff]  ;;  %69 = vst.msk [vmem:[#allocation2] sm:$0xff] %vm68_vm0, %v1202_v6  ;;  %73 = vst.msk [vmem:[#allocation2 + $0x18] sm:$0xff] %vm68_vm0, %v1202_v6  ;;  %s1203_s0 = smov 3   ;;  %vm92_vm2 = vcmask 154648  }
  0x22   :  { %v37_v4 = vld [vmem:[#allocation4] sm:$0xff]  ;;  %74 = vst.msk [vmem:[#allocation2 + $0x20] sm:$0xff] %vm68_vm0, %v1202_v6  ;;  %70 = vst.msk [vmem:[#allocation2 + $0x8] sm:$0xff] %vm68_vm0, %v1202_v6  ;;  %v62_v7 = vld [vmem:[#allocation4 + $0x70] sm:$0xff]  ;;  %vm103_vm3 = vcmask 130048   ;;  %vm106_vm4 = vcmask 128000  }
  0x23   :  { %v46_v8 = vmax.f32 %v37_v4, %v42_v5  ;;  %v51_v9 = vld [vmem:[#allocation4 + $0x20] sm:$0xff]  ;;  %75 = vst.msk [vmem:[#allocation2 + $0x28] sm:$0x3f] %vm71_vm1, %v1202_v6  ;;  %72 = vst.msk [vmem:[#allocation2 + $0x10] sm:$0x3f] %vm71_vm1, %v1202_v6  ;;  %v57_v11 = vmax.f32 %v48_v3, %v53_v2  ;;  %v60_v12 = vld [vmem:[#allocation4 + $0x30] sm:$0xff] }
  0x24   :  { %v45_v13 = vld [vmem:[#allocation4 + $0x58] sm:$0xff]  ;;  %v54_v14 = vld [vmem:[#allocation4 + $0x68] sm:$0xff]  ;;  %s1204_s1 = smov 127   ;;  %s1205_s5 = smov 126  }
  0x25   :  { %v55_v15 = vmax.f32 %v46_v8, %v51_v9  ;;  %v49_v16 = vmax.f32 %v40_v10, %v45_v13  ;;  %v38_v17 = vld [vmem:[#allocation4 + $0x8] sm:$0xff]  ;;  %v43_v18 = vld [vmem:[#allocation4 + $0x18] sm:$0xff]  ;;  %v66_v20 = vmax.f32 %v57_v11, %v62_v7  ;;  %s1206_s6 = smov 125   ;;  %s1207_s7 = smov 124  }
  0x26   :  { %v52_v19 = vld [vmem:[#allocation4 + $0x28] sm:$0xff]  ;;  %v63_v21 = vld [vmem:[#allocation4 + $0x78] sm:$0xff]  ;;  %v47_v22 = vmax.f32 %v38_v17, %v43_v18  ;;  %s1208_s8 = smov 123   ;;  %s1209_s9 = smov 122  }
  0x27   :  { %v64_v23 = vmax.f32 %v55_v15, %v60_v12  ;;  %v58_v24 = vmax.f32 %v49_v16, %v54_v14  ;;  %v61_v25 = vld [vmem:[#allocation4 + $0x38] sm:$0xff]  ;;  %84 = vrot.lane.b32.xlu1 %v66_v20, %s1203_s0  ;;  %s1061_s10 = sld [smem:[#allocation8 + $0x80]]  ;;  %s1276_s17 = sld [smem:[#allocation8 + $0x1]] }
  0x28   :  { %v56_v26 = vmax.f32 %v47_v22, %v52_v19  ;;  %s333_s11 = sld [smem:[#allocation8]]  ;;  %s1278_s18 = sld [smem:[#allocation8 + $0x81]] }
  0x29   :  { %80 = vrot.lane.b32.xlu0 %v64_v23, %s1203_s0  ;;  %v67_v27 = vmax.f32 %v58_v24, %v63_v21  ;;  %s1062_s12 = sld [smem:[#allocation8 + $0x100]]  ;;  %s1280_s21 = sld [smem:[#allocation8 + $0x101]] }
  0x2a   :  { %v65_v28 = vmax.f32 %v56_v26, %v61_v25  ;;  %s1268_s13 = sld [smem:[#allocation8 + $0x180]]  ;;  %s1282_s22 = sld [smem:[#allocation8 + $0x181]] }
  0x2b   :  { %86 = vrot.lane.b32.xlu1 %v67_v27, %s1203_s0  ;;  %s1270_s14 = sld [smem:[#allocation8 + $0x200]]  ;;  %s1284_s23 = sld [smem:[#allocation8 + $0x2]] }
  0x2c   :  { %s1272_s15 = sld [smem:[#allocation8 + $0x280]]  ;;  %s1286_s24 = sld [smem:[#allocation8 + $0x82]] }
  0x2d   :  { %82 = vrot.lane.b32.xlu0 %v65_v28, %s1203_s0  ;;  %v348_v55 = vstv %s1061_s10  ;;  %s1274_s16 = sld [smem:[#allocation8 + $0x300]]  ;;  %s1289_s25 = sld [smem:[#allocation8 + $0x102]] }
  0x2e   :  { %v338_v60 = vstv %s333_s11  ;;  %s1291_s26 = sld [smem:[#allocation8 + $0x182]]  ;;  %s1293_s27 = sld [smem:[#allocation8 + $0x201]] }
  0x2f   :  { %v362_v9 = vstv %s1062_s12  ;;  %s1295_s28 = sld [smem:[#allocation8 + $0x281]]  ;;  %s1297_s29 = sld [smem:[#allocation8 + $0x3]] }
  0x30   :  { %v376_v22 = vstv %s1268_s13  ;;  %s1299_s30 = sld [smem:[#allocation8 + $0x301]]  ;;  %s1302_s3 = sld [smem:[#allocation8 + $0x202]] }
  0x31   :  { %s1304_s4 = sld [smem:[#allocation8 + $0x282]]  ;;  %s1306_s0 = sld [smem:[#allocation8 + $0x83]] }
  0x32   :  { %s1321_s10 = sld [smem:[#allocation8 + $0x303]]  ;;  %s1323_s11 = sld [smem:[#allocation8 + $0x84]] }
  0x33   :  { %s1325_s12 = sld [smem:[#allocation8 + $0x104]]  ;;  %s1340_s19 = sld [smem:[#allocation8 + $0x105]] }
  0x34   :  { %s1327_s13 = sld [smem:[#allocation8 + $0x184]] }
  0x99   :  { %v85_v29 = vpop.permute.xlu1 %84 }
  0x9a   :  { %95 = vst.msk [vmem:[#allocation2 + $0x1b] sm:$0xff] %vm92_vm2, %v85_v29 }
  0x9b   :  { %v81_v30 = vpop.permute.xlu0 %80 }
  0x9c   :  { %93 = vst.msk [vmem:[#allocation2 + $0x3] sm:$0xff] %vm92_vm2, %v81_v30 }
  0x9d   :  { %v87_v31 = vpop.permute.xlu1 %86 }
  0x9e   :  { %96 = vst.msk [vmem:[#allocation2 + $0x23] sm:$0xff] %vm92_vm2, %v87_v31 }
  0x9f   :  { %v83_v32 = vpop.permute.xlu0 %82 }
  0xa0   :  { %94 = vst.msk [vmem:[#allocation2 + $0xb] sm:$0xff] %vm92_vm2, %v83_v32 }
  0xa1   :  { %v1253_v33 = vld [vmem:[#allocation2 + $0x18] sm:$0xff] }
  0xa2   :  { %108 = vst.msk [vmem:[#allocation3 + $0x18] sm:$0xff] %vm103_vm3, %v1253_v33 }
  0xa3   :  { %v97_v34 = vld [vmem:[#allocation2] sm:$0xff] }
  0xa4   :  { %104 = vst.msk [vmem:[#allocation3] sm:$0xff] %vm103_vm3, %v97_v34  ;;  %123 = vrot.lane.b32.xlu0 %v97_v34, %s1204_s1 }
  0xa5   :  { %v101_v35 = vld [vmem:[#allocation2 + $0x20] sm:$0xff]  ;;  %v102_v36 = vld [vmem:[#allocation2 + $0x28] sm:$0x3f] }
  0xa6   :  { %109 = vst.msk [vmem:[#allocation3 + $0x20] sm:$0xff] %vm103_vm3, %v101_v35  ;;  %v116_v40 = vld [vmem:[#allocation2 + $0x28] sm:$0x3f] }
  0xa7   :  { %110 = vst.msk [vmem:[#allocation3 + $0x28] sm:$0x3f] %vm106_vm4, %v102_v36  ;;  %v98_v37 = vld [vmem:[#allocation2 + $0x8] sm:$0xff]  ;;  %v99_v38 = vld [vmem:[#allocation2 + $0x10] sm:$0x3f] }
  0xa8   :  { %v113_v39 = vld [vmem:[#allocation2 + $0x10] sm:$0x3f]  ;;  %105 = vst.msk [vmem:[#allocation3 + $0x8] sm:$0xff] %vm103_vm3, %v98_v37  ;;  %125 = vrot.lane.b32.xlu1 %v98_v37, %s1204_s1  ;;  %v153_v42 = vld [vmem:[#allocation2 + $0x28] sm:$0x3f] }
  0xa9   :  { %107 = vst.msk [vmem:[#allocation3 + $0x10] sm:$0x3f] %vm106_vm4, %v99_v38  ;;  %127 = vrot.lane.b32.xlu0 %v113_v39, %s1204_s1  ;;  %v150_v41 = vld [vmem:[#allocation2 + $0x10] sm:$0x3f]  ;;  %v190_v44 = vld [vmem:[#allocation2 + $0x28] sm:$0x3f] }
  0xaa   :  { %v187_v43 = vld [vmem:[#allocation2 + $0x10] sm:$0x3f]  ;;  %v227_v46 = vld [vmem:[#allocation2 + $0x28] sm:$0x3f] }
  0xab   :  { %v224_v45 = vld [vmem:[#allocation2 + $0x10] sm:$0x3f]  ;;  %v264_v48 = vld [vmem:[#allocation2 + $0x28] sm:$0x3f] }
  0xac   :  { %129 = vrot.lane.b32.xlu1 %v1253_v33, %s1204_s1  ;;  %v261_v47 = vld [vmem:[#allocation2 + $0x10] sm:$0x3f]  ;;  %v301_v50 = vld [vmem:[#allocation2 + $0x28] sm:$0x3f] }
  0xad   :  { %131 = vrot.lane.b32.xlu0 %v101_v35, %s1204_s1  ;;  %v298_v49 = vld [vmem:[#allocation2 + $0x10] sm:$0x3f]  ;;  %v336_v51 = vld [vmem:[#allocation3 + $0x18] sm:$0xff] }
  0xae   :  { %v337_v56 = vld [vmem:[#allocation3 + $0x20] sm:$0xff]  ;;  %v341_v0 = vmul.f32 %v338_v60, %v336_v51 }
  0xaf   :  { %v335_v52 = vld [vmem:[#allocation3 + $0x8] sm:$0xff]  ;;  %v346_v57 = vld [vmem:[#allocation3 + $0x19] sm:$0xff]  ;;  %v342_v1 = vmul.f32 %v338_v60, %v337_v56  ;;  %v1336_v56 = vstv %s1278_s18  ;;  %s1359_s18 = sld [smem:[#allocation8 + $0x284]] }
  0xb0   :  { %133 = vrot.lane.b32.xlu1 %v116_v40, %s1204_s1  ;;  %v344_v53 = vld [vmem:[#allocation3 + $0x1] sm:$0xff]  ;;  %v345_v54 = vld [vmem:[#allocation3 + $0x9] sm:$0xff]  ;;  %v340_v61 = vmul.f32 %v338_v60, %v335_v52  ;;  %v351_v2 = vmul.f32 %v348_v55, %v346_v57  ;;  %s1308_s1 = sld [smem:[#allocation8 + $0x302]] }
  0xb1   :  { %160 = vrot.lane.b32.xlu0 %v97_v34, %s1205_s5  ;;  %v347_v58 = vld [vmem:[#allocation3 + $0x21] sm:$0xff]  ;;  %v349_v62 = vmul.f32 %v348_v55, %v344_v53  ;;  %v350_v63 = vmul.f32 %v348_v55, %v345_v54  ;;  %v359_v8 = vld [vmem:[#allocation3 + $0xa] sm:$0xff]  ;;  %v418_v53 = vstv %s1274_s16  ;;  %v1333_v54 = vstv %s1276_s17  ;;  %s1349_s16 = sld [smem:[#allocation8 + $0x185]]  ;;  %s1351_s17 = sld [smem:[#allocation8 + $0x204]] }
  0xb2   :  { %v334_v59 = vld [vmem:[#allocation3] sm:$0xff]  ;;  %v352_v3 = vmul.f32 %v348_v55, %v347_v58  ;;  %v355_v12 = vadd.f32 %v351_v2, %v341_v0  ;;  %v364_v17 = vmul.f32 %v362_v9, %v359_v8  ;;  %v373_v21 = vld [vmem:[#allocation3 + $0xb] sm:$0xff]  ;;  %v1357_v2 = vstv %s1286_s24  ;;  %s1373_s24 = sld [smem:[#allocation8 + $0x106]] }
  0xb3   :  { %v339_v4 = vmul.f32 %v338_v60, %v334_v59  ;;  %v360_v5 = vld [vmem:[#allocation3 + $0x1a] sm:$0xff]  ;;  %v361_v6 = vld [vmem:[#allocation3 + $0x22] sm:$0xff]  ;;  %v354_v11 = vadd.f32 %v350_v63, %v340_v61  ;;  %v378_v30 = vmul.f32 %v376_v22, %v373_v21  ;;  %v387_v32 = vld [vmem:[#allocation3 + $0xc] sm:$0xff]  ;;  %v1344_v59 = vstv %s1280_s21  ;;  %s1361_s21 = sld [smem:[#allocation8 + $0x304]] }
  0xb4   :  { %162 = vrot.lane.b32.xlu1 %v98_v37, %s1205_s5  ;;  %v358_v7 = vld [vmem:[#allocation3 + $0x2] sm:$0xff]  ;;  %v356_v13 = vadd.f32 %v352_v3, %v342_v1  ;;  %v365_v14 = vmul.f32 %v362_v9, %v360_v5  ;;  %v366_v15 = vmul.f32 %v362_v9, %v361_v6  ;;  %v1347_v60 = vstv %s1282_s22  ;;  %v415_v0 = vld [vmem:[#allocation3 + $0xe] sm:$0xff]  ;;  %s1369_s22 = sld [smem:[#allocation8 + $0x6]] }
  0xb5   :  { %164 = vrot.lane.b32.xlu0 %v150_v41, %s1205_s5  ;;  %v353_v10 = vadd.f32 %v349_v62, %v339_v4  ;;  %v363_v16 = vmul.f32 %v362_v9, %v358_v7  ;;  %v374_v18 = vld [vmem:[#allocation3 + $0x1b] sm:$0xff]  ;;  %v375_v19 = vld [vmem:[#allocation3 + $0x23] sm:$0xff]  ;;  %v368_v24 = vadd.f32 %v364_v17, %v354_v11  ;;  %v1354_v1 = vstv %s1284_s23  ;;  %s1371_s23 = sld [smem:[#allocation8 + $0x86]] }
  0xb6   :  { %v372_v20 = vld [vmem:[#allocation3 + $0x3] sm:$0xff]  ;;  %v369_v25 = vadd.f32 %v365_v14, %v355_v12  ;;  %v370_v26 = vadd.f32 %v366_v15, %v356_v13  ;;  %v379_v27 = vmul.f32 %v376_v22, %v374_v18  ;;  %v380_v28 = vmul.f32 %v376_v22, %v375_v19 }
  0xb7   :  { %v367_v23 = vadd.f32 %v363_v16, %v353_v10  ;;  %v377_v29 = vmul.f32 %v376_v22, %v372_v20  ;;  %v386_v31 = vld [vmem:[#allocation3 + $0x4] sm:$0xff]  ;;  %v388_v36 = vld [vmem:[#allocation3 + $0x1c] sm:$0xff]  ;;  %v1364_v7 = vstv %s1289_s25  ;;  %v1367_v8 = vstv %s1291_s26  ;;  %s1381_s25 = sld [smem:[#allocation8 + $0x205]] }
  0xb8   :  { %166 = vrot.lane.b32.xlu1 %v1253_v33, %s1205_s5  ;;  %v383_v38 = vadd.f32 %v379_v27, %v369_v25  ;;  %v384_v39 = vadd.f32 %v380_v28, %v370_v26  ;;  %v414_v63 = vld [vmem:[#allocation3 + $0x6] sm:$0xff]  ;;  %v416_v5 = vld [vmem:[#allocation3 + $0x1e] sm:$0xff]  ;;  %v420_v14 = vmul.f32 %v418_v53, %v415_v0  ;;  %v1376_v15 = vstv %s1293_s27  ;;  %s1391_s26 = sld [smem:[#allocation8 + $0x285]] }
  0xb9   :  { %168 = vrot.lane.b32.xlu0 %v101_v35, %s1205_s5  ;;  %v417_v6 = vld [vmem:[#allocation3 + $0x26] sm:$0xff]  ;;  %v419_v13 = vmul.f32 %v418_v53, %v414_v63  ;;  %v1379_v16 = vstv %s1295_s28  ;;  %v1386_v17 = vstv %s1297_s29  ;;  %v421_v18 = vmul.f32 %v418_v53, %v416_v5  ;;  %s1393_s27 = sld [smem:[#allocation8 + $0x305]]  ;;  %s1405_s28 = sld [smem:[#allocation8 + $0x186]] }
  0xba   :  { %v422_v19 = vmul.f32 %v418_v53, %v417_v6  ;;  %v1389_v20 = vstv %s1299_s30  ;;  %v1396_v21 = vstv %s1306_s0  ;;  %s1407_s29 = sld [smem:[#allocation8 + $0x206]]  ;;  %v1417_v28 = vstv %s1302_s3 }
  0xbb   :  { %s1419_s30 = sld [smem:[#allocation8 + $0x286]]  ;;  %v1474_v53 = vstv %s1369_s22 }
  0xbc   :  { %170 = vrot.lane.b32.xlu1 %v153_v42, %s1205_s5  ;;  %s1310_s5 = sld [smem:[#allocation8 + $0x103]]  ;;  %s1421_s0 = sld [smem:[#allocation8 + $0x306]]  ;;  %1811 = vst [vmem:[#allocation18_spill] sm:$0xff] %v1474_v53 }
  0xbd   :  { %197 = vrot.lane.b32.xlu0 %v97_v34, %s1206_s6 }
  0xbe   :  { %v1491_v5 = vstv %s1391_s26 }
  0xbf   :  { %1815 = vst [vmem:[#allocation22_spill] sm:$0xff] %v1491_v5 }
  0xc0   :  { %199 = vrot.lane.b32.xlu1 %v98_v37, %s1206_s6 }
  0xc1   :  { %201 = vrot.lane.b32.xlu0 %v187_v43, %s1206_s6 }
  0xc2   :  { %v1399_v22 = vstv %s1310_s5 }
  0xc4   :  { %203 = vrot.lane.b32.xlu1 %v1253_v33, %s1206_s6 }
  0xc5   :  { %205 = vrot.lane.b32.xlu0 %v101_v35, %s1206_s6 }
  0xc8   :  { %207 = vrot.lane.b32.xlu1 %v190_v44, %s1206_s6  ;;  %s1312_s6 = sld [smem:[#allocation8 + $0x183]]  ;;  %v400_v44 = vld [vmem:[#allocation3 + $0x5] sm:$0xff] }
  0xc9   :  { %234 = vrot.lane.b32.xlu0 %v97_v34, %s1207_s7 }
  0xcc   :  { %236 = vrot.lane.b32.xlu1 %v98_v37, %s1207_s7 }
  0xcd   :  { %238 = vrot.lane.b32.xlu0 %v224_v45, %s1207_s7  ;;  %v401_v45 = vld [vmem:[#allocation3 + $0xd] sm:$0xff] }
  0xce   :  { %v1410_v25 = vstv %s1312_s6 }
  0xd0   :  { %240 = vrot.lane.b32.xlu1 %v1253_v33, %s1207_s7 }
  0xd1   :  { %242 = vrot.lane.b32.xlu0 %v101_v35, %s1207_s7 }
  0xd4   :  { %244 = vrot.lane.b32.xlu1 %v227_v46, %s1207_s7  ;;  %s1314_s7 = sld [smem:[#allocation8 + $0x4]]  ;;  %v404_v46 = vstv %s1272_s15  ;;  %s1338_s15 = sld [smem:[#allocation8 + $0x85]] }
  0xd5   :  { %271 = vrot.lane.b32.xlu0 %v97_v34, %s1208_s8  ;;  %v405_v57 = vmul.f32 %v404_v46, %v400_v44  ;;  %v406_v58 = vmul.f32 %v404_v46, %v401_v45  ;;  %v1462_v44 = vstv %s1349_s16  ;;  %v1465_v45 = vstv %s1351_s17 }
  0xd8   :  { %273 = vrot.lane.b32.xlu1 %v98_v37, %s1208_s8 }
  0xd9   :  { %275 = vrot.lane.b32.xlu0 %v261_v47, %s1208_s8 }
  0xdc   :  { %277 = vrot.lane.b32.xlu1 %v1253_v33, %s1208_s8 }
  0xdd   :  { %279 = vrot.lane.b32.xlu0 %v101_v35, %s1208_s8 }
  0xe0   :  { %281 = vrot.lane.b32.xlu1 %v264_v48, %s1208_s8  ;;  %s1316_s8 = sld [smem:[#allocation8 + $0x203]] }
  0xe1   :  { %308 = vrot.lane.b32.xlu0 %v97_v34, %s1209_s9  ;;  %v381_v34 = vadd.f32 %v377_v29, %v367_v23 }
  0xe4   :  { %310 = vrot.lane.b32.xlu1 %v98_v37, %s1209_s9  ;;  %v389_v37 = vld [vmem:[#allocation3 + $0x24] sm:$0xff] }
  0xe5   :  { %312 = vrot.lane.b32.xlu0 %v298_v49, %s1209_s9  ;;  %v402_v49 = vld [vmem:[#allocation3 + $0x1d] sm:$0xff] }
  0xe6   :  { %v407_v61 = vmul.f32 %v404_v46, %v402_v49 }
  0xe8   :  { %314 = vrot.lane.b32.xlu1 %v1253_v33, %s1209_s9  ;;  %v390_v33 = vstv %s1270_s14  ;;  %s1329_s14 = sld [smem:[#allocation8 + $0x5]] }
  0xe9   :  { %316 = vrot.lane.b32.xlu0 %v101_v35, %s1209_s9  ;;  %v382_v35 = vadd.f32 %v378_v30, %v368_v24  ;;  %v391_v40 = vmul.f32 %v390_v33, %v386_v31  ;;  %v392_v41 = vmul.f32 %v390_v33, %v387_v32  ;;  %v393_v42 = vmul.f32 %v390_v33, %v388_v36 }
  0xea   :  { %v394_v43 = vmul.f32 %v390_v33, %v389_v37  ;;  %v1424_v31 = vstv %s1314_s7  ;;  %v1427_v32 = vstv %s1304_s4  ;;  %v1430_v33 = vstv %s1308_s1 }
  0xeb   :  { %v395_v47 = vadd.f32 %v391_v40, %v381_v34  ;;  %v396_v48 = vadd.f32 %v392_v41, %v382_v35  ;;  %v397_v51 = vadd.f32 %v393_v42, %v383_v38  ;;  %v1433_v34 = vstv %s1316_s8 }
  0xec   :  { %318 = vrot.lane.b32.xlu1 %v301_v50, %s1209_s9  ;;  %s1319_s9 = sld [smem:[#allocation8 + $0x283]]  ;;  %v403_v50 = vld [vmem:[#allocation3 + $0x25] sm:$0xff]  ;;  %v398_v52 = vadd.f32 %v394_v43, %v384_v39  ;;  %v1438_v35 = vstv %s1323_s11  ;;  %v1441_v36 = vstv %s1325_s12  ;;  %v1447_v38 = vstv %s1321_s10 }
  0xed   :  { %v408_v62 = vmul.f32 %v404_v46, %v403_v50  ;;  %v409_v3 = vadd.f32 %v405_v57, %v395_v47  ;;  %v410_v4 = vadd.f32 %v406_v58, %v396_v48  ;;  %v411_v9 = vadd.f32 %v407_v61, %v397_v51 }
  0xee   :  { %v1450_v40 = vstv %s1327_s13  ;;  %v1453_v41 = vstv %s1329_s14  ;;  %v1456_v42 = vstv %s1338_s15  ;;  %v1459_v43 = vstv %s1340_s19  ;;  %s1210_s19 = smov [#allocation9]  }
  0xef   :  { %v412_v10 = vadd.f32 %v408_v62, %v398_v52  ;;  %v1401_v23 = vadd.f32 %v419_v13, %v409_v3  ;;  %v1403_v24 = vadd.f32 %v420_v14, %v410_v4  ;;  %v1412_v26 = vadd.f32 %v421_v18, %v411_v9  ;;  %s1048_s3 = sshll.u32 %s1210_s19, 4  ;;  %s1049_s3 = int_to_ptr.vmem [resolvable:$true] %s1048_s3 }
  0xf0   :  { %v1468_v46 = vstv %s1359_s18  ;;  %v1471_v47 = vstv %s1361_s21  ;;  %v1480_v57 = vstv %s1373_s24  ;;  %v1483_v58 = vstv %s1381_s25  ;;  %s1170_s4 = scalar_lea.vmem %s1049_s3, 512  ;;  %p1175_p12 = scmp.lt.s32.totalorder %s1049_s3, %s1049_s3 }
  0xf1   :  { %1806 = vst [vmem:[#allocation13_spill] sm:$0xff] %v1401_v23  ;;  %1807 = vst [vmem:[#allocation14_spill] sm:$0xff] %v1403_v24  ;;  %v1414_v27 = vadd.f32 %v422_v19, %v412_v10  ;;  %v1498_v13 = vstv %s1405_s28  ;;  %v1501_v14 = vstv %s1407_s29  ;;  %p1171_p11 = scmp.ne.s32.totalorder %s1049_s3, %s1170_s4  ;;  %p1176_p13 = scmp.lt.s32.totalorder %s1170_s4, %s1170_s4 }
  0xf2   :  { %1808 = vst [vmem:[#allocation15_spill] sm:$0xff] %v1412_v26  ;;  %v1444_v37 = vstv %s1319_s9  ;;  %1810 = vst [vmem:[#allocation17_spill] sm:$0xff] %v1471_v47 }
  0xf3   :  { %1809 = vst [vmem:[#allocation16_spill] sm:$0xff] %v1414_v27  ;;  %1813 = vst [vmem:[#allocation20_spill] sm:$0xff] %v1480_v57  ;;  %p1177_p0 = por %p1176_p13, %p1175_p12 }
  0xf4   :  { %1814 = vst [vmem:[#allocation21_spill] sm:$0xff] %v1483_v58  ;;  %1817 = vst [vmem:[#allocation24_spill] sm:$0xff] %v1498_v13 }
  0xf5   :  { %1818 = vst [vmem:[#allocation25_spill] sm:$0xff] %v1501_v14  ;;  %p1178_p1 = pnand %p1177_p0, %p1171_p11 }
 0x116   :  { %v124_v55 = vpop.permute.xlu0 %123 }
 0x117   :  { %142 = vst.msk [vmem:[#allocation3 + $0x30] sm:$0xff] %vm103_vm3, %v124_v55  ;;  %v1477_v55 = vstv %s1371_s23 }
 0x118   :  { %1812 = vst [vmem:[#allocation19_spill] sm:$0xff] %v1477_v55 }
 0x11a   :  { %v126_v11 = vpop.permute.xlu1 %125 }
 0x11b   :  { %v128_v12 = vpop.permute.xlu0 %127  ;;  %143 = vst.msk [vmem:[#allocation3 + $0x38] sm:$0xff] %vm103_vm3, %v126_v11 }
 0x11c   :  { %144 = vst.msk [vmem:[#allocation3 + $0x40] sm:$0x3f] %vm106_vm4, %v128_v12  ;;  %v1495_v12 = vstv %s1393_s27 }
 0x11d   :  { %1816 = vst [vmem:[#allocation23_spill] sm:$0xff] %v1495_v12 }
 0x11e   :  { %v130_v29 = vpop.permute.xlu1 %129  ;;  %v428_v39 = vld [vmem:[#allocation3 + $0x30] sm:$0xff] }
 0x11f   :  { %v132_v30 = vpop.permute.xlu0 %131  ;;  %145 = vst.msk [vmem:[#allocation3 + $0x48] sm:$0xff] %vm103_vm3, %v130_v29  ;;  %v433_v61 = vmul.f32 %v1333_v54, %v428_v39 }
 0x120   :  { %146 = vst.msk [vmem:[#allocation3 + $0x50] sm:$0xff] %vm103_vm3, %v132_v30 }
 0x122   :  { %v429_v48 = vld [vmem:[#allocation3 + $0x38] sm:$0xff]  ;;  %v134_v51 = vpop.permute.xlu1 %133 }
 0x123   :  { %v438_v49 = vld [vmem:[#allocation3 + $0x31] sm:$0xff]  ;;  %v161_v52 = vpop.permute.xlu0 %160  ;;  %v434_v62 = vmul.f32 %v1333_v54, %v429_v48  ;;  %v439_v4 = vld [vmem:[#allocation3 + $0x39] sm:$0xff]  ;;  %147 = vst.msk [vmem:[#allocation3 + $0x58] sm:$0x3f] %vm106_vm4, %v134_v51  ;;  %v1505_v48 = vstv %s1419_s30 }
 0x124   :  { %v452_v50 = vld [vmem:[#allocation3 + $0x32] sm:$0xff]  ;;  %v443_v63 = vmul.f32 %v1336_v56, %v438_v49  ;;  %179 = vst.msk [vmem:[#allocation3 + $0x60] sm:$0xff] %vm103_vm3, %v161_v52  ;;  %v444_v6 = vmul.f32 %v1336_v56, %v439_v4  ;;  %v453_v9 = vld [vmem:[#allocation3 + $0x3a] sm:$0xff]  ;;  %1819 = vst [vmem:[#allocation26_spill] sm:$0xff] %v1505_v48  ;;  %v1508_v49 = vstv %s1421_s0 }
 0x125   :  { %v466_v0 = vld [vmem:[#allocation3 + $0x33] sm:$0xff]  ;;  %v467_v10 = vld [vmem:[#allocation3 + $0x3b] sm:$0xff]  ;;  %v457_v19 = vmul.f32 %v1344_v59, %v452_v50  ;;  %1820 = vst [vmem:[#allocation27_spill] sm:$0xff] %v1508_v49  ;;  %v458_v4 = vmul.f32 %v1344_v59, %v453_v9 }
 0x126   :  { %v480_v3 = vld [vmem:[#allocation3 + $0x34] sm:$0xff]  ;;  %v481_v11 = vld [vmem:[#allocation3 + $0x3c] sm:$0xff]  ;;  %v447_v18 = vadd.f32 %v443_v63, %v433_v61  ;;  %v471_v51 = vmul.f32 %v1347_v60, %v466_v0  ;;  %v448_v52 = vadd.f32 %v444_v6, %v434_v62  ;;  %v430_v27 = vld [vmem:[#allocation3 + $0x48] sm:$0xff]  ;;  %v163_v23 = vpop.permute.xlu1 %162  ;;  %v472_v50 = vmul.f32 %v1347_v60, %v467_v10 }
 0x127   :  { %v494_v29 = vld [vmem:[#allocation3 + $0x35] sm:$0xff]  ;;  %v495_v30 = vld [vmem:[#allocation3 + $0x3d] sm:$0xff]  ;;  %v440_v24 = vld [vmem:[#allocation3 + $0x49] sm:$0xff]  ;;  %v165_v14 = vpop.permute.xlu0 %164  ;;  %v485_v61 = vmul.f32 %v1376_v15, %v480_v3  ;;  %v435_v63 = vmul.f32 %v1333_v54, %v430_v27  ;;  %180 = vst.msk [vmem:[#allocation3 + $0x68] sm:$0xff] %vm103_vm3, %v163_v23  ;;  %v486_v6 = vmul.f32 %v1376_v15, %v481_v11 }
 0x128   :  { %v508_v39 = vld [vmem:[#allocation3 + $0x36] sm:$0xff]  ;;  %v445_v48 = vmul.f32 %v1336_v56, %v440_v24  ;;  %v454_v13 = vld [vmem:[#allocation3 + $0x4a] sm:$0xff]  ;;  %181 = vst.msk [vmem:[#allocation3 + $0x70] sm:$0x3f] %vm106_vm4, %v165_v14  ;;  %v461_v62 = vadd.f32 %v457_v19, %v447_v18  ;;  %v462_v0 = vadd.f32 %v458_v4, %v448_v52  ;;  %v499_v3 = vmul.f32 %v1379_v16, %v494_v29  ;;  %v509_v5 = vld [vmem:[#allocation3 + $0x3e] sm:$0xff] }
 0x129   :  { %v431_v26 = vld [vmem:[#allocation3 + $0x50] sm:$0xff]  ;;  %v500_v10 = vmul.f32 %v1379_v16, %v495_v30  ;;  %v459_v24 = vmul.f32 %v1344_v59, %v454_v13  ;;  %v513_v58 = vmul.f32 %v1389_v20, %v508_v39 }
 0x12a   :  { %v468_v49 = vld [vmem:[#allocation3 + $0x4b] sm:$0xff]  ;;  %v449_v27 = vadd.f32 %v445_v48, %v435_v63  ;;  %v475_v57 = vadd.f32 %v471_v51, %v461_v62  ;;  %v436_v23 = vmul.f32 %v1333_v54, %v431_v26  ;;  %v469_v11 = vld [vmem:[#allocation3 + $0x53] sm:$0xff]  ;;  %v167_v52 = vpop.permute.xlu1 %166  ;;  %v476_v29 = vadd.f32 %v472_v50, %v462_v0 }
 0x12b   :  { %v482_v12 = vld [vmem:[#allocation3 + $0x4c] sm:$0xff]  ;;  %v473_v14 = vmul.f32 %v1347_v60, %v468_v49  ;;  %v169_v4 = vpop.permute.xlu0 %168  ;;  %v483_v63 = vld [vmem:[#allocation3 + $0x54] sm:$0xff]  ;;  %v522_v13 = vld [vmem:[#allocation3 + $0x60] sm:$0xff]  ;;  %182 = vst.msk [vmem:[#allocation3 + $0x78] sm:$0xff] %vm103_vm3, %v167_v52  ;;  %v514_v49 = vmul.f32 %v1389_v20, %v509_v5 }
 0x12c   :  { %v496_v9 = vld [vmem:[#allocation3 + $0x4d] sm:$0xff]  ;;  %v487_v30 = vmul.f32 %v1376_v15, %v482_v12  ;;  %183 = vst.msk [vmem:[#allocation3 + $0x80] sm:$0xff] %vm103_vm3, %v169_v4  ;;  %v463_v39 = vadd.f32 %v459_v24, %v449_v27  ;;  %v497_v54 = vld [vmem:[#allocation3 + $0x55] sm:$0xff]  ;;  %v489_v62 = vadd.f32 %v485_v61, %v475_v57  ;;  %v490_v50 = vadd.f32 %v486_v6, %v476_v29 }
 0x12d   :  { %v510_v55 = vld [vmem:[#allocation3 + $0x4e] sm:$0xff]  ;;  %v501_v26 = vmul.f32 %v1379_v16, %v496_v9  ;;  %v511_v0 = vld [vmem:[#allocation3 + $0x56] sm:$0xff]  ;;  %v527_v52 = vmul.f32 %v1354_v1, %v522_v13  ;;  %v488_v5 = vmul.f32 %v1376_v15, %v483_v63 }
 0x12e   :  { %v441_v18 = vld [vmem:[#allocation3 + $0x51] sm:$0xff]  ;;  %v515_v12 = vmul.f32 %v1389_v20, %v510_v55  ;;  %v477_v53 = vadd.f32 %v473_v14, %v463_v39  ;;  %v523_v4 = vld [vmem:[#allocation3 + $0x68] sm:$0xff]  ;;  %v171_v47 = vpop.permute.xlu1 %170  ;;  %v503_v57 = vadd.f32 %v499_v3, %v489_v62  ;;  %v504_v61 = vadd.f32 %v500_v10, %v490_v50 }
 0x12f   :  { %v455_v19 = vld [vmem:[#allocation3 + $0x52] sm:$0xff]  ;;  %v446_v48 = vmul.f32 %v1336_v56, %v441_v18  ;;  %v474_v18 = vmul.f32 %v1347_v60, %v469_v11  ;;  %v532_v27 = vld [vmem:[#allocation3 + $0x61] sm:$0xff]  ;;  %v198_v9 = vpop.permute.xlu0 %197  ;;  %v528_v6 = vmul.f32 %v1354_v1, %v523_v4  ;;  %v533_v60 = vld [vmem:[#allocation3 + $0x69] sm:$0xff]  ;;  %184 = vst.msk [vmem:[#allocation3 + $0x88] sm:$0x3f] %vm106_vm4, %v171_v47 }
 0x130   :  { %v460_v51 = vmul.f32 %v1344_v59, %v455_v19  ;;  %v546_v24 = vld [vmem:[#allocation3 + $0x62] sm:$0xff]  ;;  %v502_v59 = vmul.f32 %v1379_v16, %v497_v54  ;;  %v537_v55 = vmul.f32 %v1357_v2, %v532_v27  ;;  %216 = vst.msk [vmem:[#allocation3 + $0x90] sm:$0xff] %vm103_vm3, %v198_v9  ;;  %v516_v19 = vmul.f32 %v1389_v20, %v511_v0  ;;  %v547_v10 = vld [vmem:[#allocation3 + $0x6a] sm:$0xff] }
 0x131   :  { %v450_v56 = vadd.f32 %v446_v48, %v436_v23  ;;  %v560_v23 = vld [vmem:[#allocation3 + $0x63] sm:$0xff]  ;;  %v551_v11 = vmul.f32 %v1364_v7, %v546_v24  ;;  %v538_v3 = vmul.f32 %v1357_v2, %v533_v60  ;;  %v561_v29 = vld [vmem:[#allocation3 + $0x6b] sm:$0xff]  ;;  %v491_v48 = vadd.f32 %v487_v30, %v477_v53 }
 0x132   :  { %v565_v15 = vmul.f32 %v1367_v8, %v560_v23  ;;  %v574_v16 = vld [vmem:[#allocation3 + $0x64] sm:$0xff]  ;;  %v541_v63 = vadd.f32 %v537_v55, %v527_v52  ;;  %v552_v13 = vmul.f32 %v1364_v7, %v547_v10  ;;  %v575_v39 = vld [vmem:[#allocation3 + $0x6c] sm:$0xff]  ;;  %v1546_v54 = vadd.f32 %v513_v58, %v503_v57  ;;  %v524_v50 = vld [vmem:[#allocation3 + $0x78] sm:$0xff]  ;;  %v200_v4 = vpop.permute.xlu1 %199 }
 0x133   :  { %v464_v14 = vadd.f32 %v460_v51, %v450_v56  ;;  %v588_v51 = vld [vmem:[#allocation3 + $0x65] sm:$0xff]  ;;  %v542_v62 = vadd.f32 %v538_v3, %v528_v6  ;;  %v566_v20 = vmul.f32 %v1367_v8, %v561_v29  ;;  %v534_v56 = vld [vmem:[#allocation3 + $0x79] sm:$0xff]  ;;  %v202_v27 = vpop.permute.xlu0 %201  ;;  %v505_v24 = vadd.f32 %v501_v26, %v491_v48  ;;  %217 = vst.msk [vmem:[#allocation3 + $0x98] sm:$0xff] %vm103_vm3, %v200_v4  ;;  %v589_v23 = vld [vmem:[#allocation3 + $0x6d] sm:$0xff] }
 0x134   :  { %v525_v0 = vld [vmem:[#allocation3 + $0x80] sm:$0xff]  ;;  %v1549_v9 = vadd.f32 %v514_v49, %v504_v61  ;;  %v529_v53 = vmul.f32 %v1354_v1, %v524_v50  ;;  %v539_v30 = vmul.f32 %v1357_v2, %v534_v56  ;;  %218 = vst.msk [vmem:[#allocation3 + $0xa0] sm:$0x3f] %vm106_vm4, %v202_v27  ;;  %v579_v6 = vmul.f32 %v1417_v28, %v574_v16 }
 0x135   :  { %v478_v47 = vadd.f32 %v474_v18, %v464_v14  ;;  %v548_v52 = vld [vmem:[#allocation3 + $0x7a] sm:$0xff]  ;;  %v530_v55 = vmul.f32 %v1354_v1, %v525_v0  ;;  %v555_v61 = vadd.f32 %v551_v11, %v541_v63  ;;  %v1559_v3 = vadd.f32 %v515_v12, %v505_v24  ;;  %v602_v48 = vld [vmem:[#allocation3 + $0x66] sm:$0xff] }
 0x136   :  { %v562_v18 = vld [vmem:[#allocation3 + $0x7b] sm:$0xff]  ;;  %v553_v26 = vmul.f32 %v1364_v7, %v548_v52  ;;  %v543_v60 = vadd.f32 %v539_v30, %v529_v53  ;;  %v556_v10 = vadd.f32 %v552_v13, %v542_v62  ;;  %v580_v1 = vmul.f32 %v1417_v28, %v575_v39  ;;  %v577_v13 = vld [vmem:[#allocation3 + $0x84] sm:$0xff] }
 0x137   :  { %v576_v58 = vld [vmem:[#allocation3 + $0x7c] sm:$0xff]  ;;  %v492_v57 = vadd.f32 %v488_v5, %v478_v47  ;;  %v567_v49 = vmul.f32 %v1367_v8, %v562_v18  ;;  %v204_v47 = vpop.permute.xlu1 %203  ;;  %v206_v16 = vpop.permute.xlu0 %205  ;;  %v569_v4 = vadd.f32 %v565_v15, %v555_v61  ;;  %v593_v11 = vmul.f32 %v1427_v32, %v588_v51  ;;  %v616_v62 = vld [vmem:[#allocation3 + $0x90] sm:$0xff]  ;;  %v591_v27 = vld [vmem:[#allocation3 + $0x85] sm:$0xff] }
 0x138   :  { %v590_v29 = vld [vmem:[#allocation3 + $0x7d] sm:$0xff]  ;;  %v581_v0 = vmul.f32 %v1417_v28, %v576_v58  ;;  %219 = vst.msk [vmem:[#allocation3 + $0xa8] sm:$0xff] %vm103_vm3, %v204_v47  ;;  %220 = vst.msk [vmem:[#allocation3 + $0xb0] sm:$0xff] %vm103_vm3, %v206_v16  ;;  %v594_v15 = vmul.f32 %v1427_v32, %v589_v23  ;;  %v621_v39 = vmul.f32 %v1386_v17, %v616_v62 }
 0x139   :  { %v506_v14 = vadd.f32 %v502_v59, %v492_v57  ;;  %v535_v50 = vld [vmem:[#allocation3 + $0x81] sm:$0xff]  ;;  %v557_v51 = vadd.f32 %v553_v26, %v543_v60  ;;  %v570_v53 = vadd.f32 %v566_v20, %v556_v10  ;;  %v595_v52 = vmul.f32 %v1427_v32, %v590_v29 }
 0x13a   :  { %v549_v56 = vld [vmem:[#allocation3 + $0x82] sm:$0xff]  ;;  %v540_v63 = vmul.f32 %v1357_v2, %v535_v50  ;;  %v603_v2 = vld [vmem:[#allocation3 + $0x6e] sm:$0xff]  ;;  %v617_v18 = vld [vmem:[#allocation3 + $0x98] sm:$0xff] }
 0x13b   :  { %v563_v5 = vld [vmem:[#allocation3 + $0x83] sm:$0xff]  ;;  %v554_v12 = vmul.f32 %v1364_v7, %v549_v56  ;;  %v1571_v24 = vadd.f32 %v516_v19, %v506_v14  ;;  %v582_v7 = vmul.f32 %v1417_v28, %v577_v13  ;;  %v626_v58 = vld [vmem:[#allocation3 + $0x91] sm:$0xff]  ;;  %v208_v61 = vpop.permute.xlu1 %207  ;;  %v235_v50 = vpop.permute.xlu0 %234  ;;  %v571_v56 = vadd.f32 %v567_v49, %v557_v51  ;;  %v627_v28 = vld [vmem:[#allocation3 + $0x99] sm:$0xff] }
 0x13c   :  { %v568_v59 = vmul.f32 %v1367_v8, %v563_v5  ;;  %v544_v30 = vadd.f32 %v540_v63, %v530_v55  ;;  %v583_v8 = vadd.f32 %v579_v6, %v569_v4  ;;  %v640_v57 = vld [vmem:[#allocation3 + $0x92] sm:$0xff]  ;;  %v584_v23 = vadd.f32 %v580_v1, %v570_v53  ;;  %221 = vst.msk [vmem:[#allocation3 + $0xb8] sm:$0x3f] %vm106_vm4, %v208_v61  ;;  %v641_v10 = vld [vmem:[#allocation3 + $0x9a] sm:$0xff]  ;;  %v605_v13 = vld [vmem:[#allocation3 + $0x86] sm:$0xff] }
 0x13d   :  { %v596_v5 = vmul.f32 %v1427_v32, %v591_v27  ;;  %v607_v19 = vmul.f32 %v1430_v33, %v602_v48  ;;  %v622_v20 = vmul.f32 %v1386_v17, %v617_v18  ;;  %v631_v55 = vmul.f32 %v1396_v21, %v626_v58  ;;  %v654_v26 = vld [vmem:[#allocation3 + $0x93] sm:$0xff]  ;;  %253 = vst.msk [vmem:[#allocation3 + $0xc0] sm:$0xff] %vm103_vm3, %v235_v50  ;;  %v655_v29 = vld [vmem:[#allocation3 + $0x9b] sm:$0xff] }
 0x13e   :  { %v558_v6 = vadd.f32 %v554_v12, %v544_v30  ;;  %v608_v60 = vmul.f32 %v1430_v33, %v603_v2  ;;  %v645_v49 = vmul.f32 %v1399_v22, %v640_v57  ;;  %v659_v14 = vmul.f32 %v1410_v25, %v654_v26  ;;  %v604_v47 = vld [vmem:[#allocation3 + $0x7e] sm:$0xff]  ;;  %v668_v57 = vld [vmem:[#allocation3 + $0x94] sm:$0xff] }
 0x13f   :  { %v632_v32 = vmul.f32 %v1396_v21, %v627_v28  ;;  %v585_v48 = vadd.f32 %v581_v0, %v571_v56  ;;  %v635_v16 = vadd.f32 %v631_v55, %v621_v39  ;;  %v646_v4 = vmul.f32 %v1399_v22, %v641_v10  ;;  %v618_v27 = vld [vmem:[#allocation3 + $0xa8] sm:$0xff]  ;;  %v619_v51 = vld [vmem:[#allocation3 + $0xb0] sm:$0xff]  ;;  %v237_v2 = vpop.permute.xlu1 %236  ;;  %v239_v30 = vpop.permute.xlu0 %238 }
 0x140   :  { %v572_v1 = vadd.f32 %v568_v59, %v558_v6  ;;  %v597_v63 = vadd.f32 %v593_v11, %v583_v8  ;;  %v660_v12 = vmul.f32 %v1410_v25, %v655_v29  ;;  %v628_v53 = vld [vmem:[#allocation3 + $0xa9] sm:$0xff]  ;;  %v598_v18 = vadd.f32 %v594_v15, %v584_v23  ;;  %254 = vst.msk [vmem:[#allocation3 + $0xc8] sm:$0xff] %vm103_vm3, %v237_v2  ;;  %v669_v8 = vld [vmem:[#allocation3 + $0x9c] sm:$0xff] }
 0x141   :  { %v636_v62 = vadd.f32 %v632_v32, %v622_v20  ;;  %v599_v58 = vadd.f32 %v595_v52, %v585_v48  ;;  %v623_v0 = vmul.f32 %v1386_v17, %v618_v27  ;;  %v633_v39 = vmul.f32 %v1396_v21, %v628_v53  ;;  %v642_v61 = vld [vmem:[#allocation3 + $0xaa] sm:$0xff]  ;;  %255 = vst.msk [vmem:[#allocation3 + $0xd0] sm:$0x3f] %vm106_vm4, %v239_v30 }
 0x142   :  { %v656_v50 = vld [vmem:[#allocation3 + $0xab] sm:$0xff]  ;;  %v586_v11 = vadd.f32 %v582_v7, %v572_v1  ;;  %v609_v59 = vmul.f32 %v1430_v33, %v604_v47  ;;  %v624_v56 = vmul.f32 %v1386_v17, %v619_v51  ;;  %v647_v15 = vmul.f32 %v1399_v22, %v642_v61  ;;  %v682_v51 = vld [vmem:[#allocation3 + $0x95] sm:$0xff] }
 0x143   :  { %v661_v52 = vmul.f32 %v1410_v25, %v656_v50  ;;  %v610_v23 = vmul.f32 %v1430_v33, %v605_v13  ;;  %v637_v20 = vadd.f32 %v633_v39, %v623_v0  ;;  %v670_v55 = vld [vmem:[#allocation3 + $0xac] sm:$0xff]  ;;  %v1596_v28 = vadd.f32 %v607_v19, %v597_v63  ;;  %v241_v29 = vpop.permute.xlu1 %240  ;;  %v243_v48 = vpop.permute.xlu0 %242  ;;  %v671_v19 = vld [vmem:[#allocation3 + $0xb4] sm:$0xff] }
 0x144   :  { %v600_v26 = vadd.f32 %v596_v5, %v586_v11  ;;  %v1598_v6 = vadd.f32 %v608_v60, %v598_v18  ;;  %v629_v32 = vld [vmem:[#allocation3 + $0xb1] sm:$0xff]  ;;  %v1600_v47 = vadd.f32 %v609_v59, %v599_v58  ;;  %v649_v17 = vadd.f32 %v645_v49, %v635_v16  ;;  %v710_v60 = vld [vmem:[#allocation3 + $0xc0] sm:$0xff]  ;;  %256 = vst.msk [vmem:[#allocation3 + $0xd8] sm:$0xff] %vm103_vm3, %v241_v29 }
 0x145   :  { %v643_v7 = vld [vmem:[#allocation3 + $0xb2] sm:$0xff]  ;;  %v650_v1 = vadd.f32 %v646_v4, %v636_v62  ;;  %v673_v27 = vmul.f32 %v1433_v34, %v668_v57  ;;  %v634_v33 = vmul.f32 %v1396_v21, %v629_v32  ;;  %257 = vst.msk [vmem:[#allocation3 + $0xe0] sm:$0xff] %vm103_vm3, %v243_v48  ;;  %v674_v63 = vmul.f32 %v1433_v34, %v669_v8  ;;  %v683_v62 = vld [vmem:[#allocation3 + $0x9d] sm:$0xff] }
 0x146   :  { %v657_v10 = vld [vmem:[#allocation3 + $0xb3] sm:$0xff]  ;;  %v648_v13 = vmul.f32 %v1399_v22, %v643_v7  ;;  %v1609_v53 = vadd.f32 %v610_v23, %v600_v26  ;;  %v651_v49 = vadd.f32 %v647_v15, %v637_v20  ;;  %v663_v16 = vadd.f32 %v659_v14, %v649_v17 }
 0x147   :  { %v662_v5 = vmul.f32 %v1410_v25, %v657_v10  ;;  %v664_v4 = vadd.f32 %v660_v12, %v650_v1  ;;  %v638_v21 = vadd.f32 %v634_v33, %v624_v56  ;;  %v715_v22 = vmul.f32 %v1424_v31, %v710_v60  ;;  %v684_v30 = vld [vmem:[#allocation3 + $0xad] sm:$0xff]  ;;  %v720_v58 = vld [vmem:[#allocation3 + $0xc1] sm:$0xff]  ;;  %v245_v0 = vpop.permute.xlu1 %244  ;;  %v272_v39 = vpop.permute.xlu0 %271  ;;  %v685_v15 = vld [vmem:[#allocation3 + $0xb5] sm:$0xff] }
 0x148   :  { %v675_v25 = vmul.f32 %v1433_v34, %v670_v55  ;;  %v676_v2 = vmul.f32 %v1433_v34, %v671_v19  ;;  %v711_v18 = vld [vmem:[#allocation3 + $0xc8] sm:$0xff]  ;;  %v665_v61 = vadd.f32 %v661_v52, %v651_v49  ;;  %v677_v50 = vadd.f32 %v673_v27, %v663_v16  ;;  %258 = vst.msk [vmem:[#allocation3 + $0xe8] sm:$0x3f] %vm106_vm4, %v245_v0  ;;  %v696_v1 = vld [vmem:[#allocation3 + $0x96] sm:$0xff]  ;;  %v697_v27 = vld [vmem:[#allocation3 + $0x9e] sm:$0xff] }
 0x149   :  { %v734_v57 = vld [vmem:[#allocation3 + $0xc2] sm:$0xff]  ;;  %v678_v11 = vadd.f32 %v674_v63, %v664_v4  ;;  %v687_v14 = vmul.f32 %v1444_v37, %v682_v51  ;;  %v716_v12 = vmul.f32 %v1424_v31, %v711_v18  ;;  %v725_v59 = vmul.f32 %v1438_v35, %v720_v58  ;;  %290 = vst.msk [vmem:[#allocation3 + $0xf0] sm:$0xff] %vm103_vm3, %v272_v39  ;;  %v735_v26 = vld [vmem:[#allocation3 + $0xca] sm:$0xff]  ;;  %v699_v58 = vld [vmem:[#allocation3 + $0xb6] sm:$0xff] }
 0x14a   :  { %v748_v8 = vld [vmem:[#allocation3 + $0xc3] sm:$0xff]  ;;  %v652_v34 = vadd.f32 %v648_v13, %v638_v21  ;;  %v688_v23 = vmul.f32 %v1444_v37, %v683_v62  ;;  %v739_v52 = vmul.f32 %v1441_v36, %v734_v57  ;;  %v749_v32 = vld [vmem:[#allocation3 + $0xcb] sm:$0xff]  ;;  %v679_v7 = vadd.f32 %v675_v25, %v665_v61 }
 0x14b   :  { %v721_v56 = vld [vmem:[#allocation3 + $0xc9] sm:$0xff]  ;;  %v1622_v20 = vmul.f32 %v1450_v40, %v748_v8  ;;  %v729_v10 = vadd.f32 %v725_v59, %v715_v22  ;;  %v740_v29 = vmul.f32 %v1441_v36, %v735_v26  ;;  %v689_v17 = vmul.f32 %v1444_v37, %v684_v30  ;;  %v712_v60 = vld [vmem:[#allocation3 + $0xd8] sm:$0xff]  ;;  %v274_v49 = vpop.permute.xlu1 %273  ;;  %v276_v16 = vpop.permute.xlu0 %275 }
 0x14c   :  { %v726_v55 = vmul.f32 %v1438_v35, %v721_v56  ;;  %v666_v48 = vadd.f32 %v662_v5, %v652_v34  ;;  %v698_v33 = vld [vmem:[#allocation3 + $0xae] sm:$0xff]  ;;  %v754_v19 = vmul.f32 %v1450_v40, %v749_v32  ;;  %v713_v63 = vld [vmem:[#allocation3 + $0xe0] sm:$0xff]  ;;  %v690_v4 = vmul.f32 %v1444_v37, %v685_v15  ;;  %291 = vst.msk [vmem:[#allocation3 + $0xf8] sm:$0xff] %vm103_vm3, %v274_v49 }
 0x14d   :  { %v722_v51 = vld [vmem:[#allocation3 + $0xd9] sm:$0xff]  ;;  %v691_v62 = vadd.f32 %v687_v14, %v677_v50  ;;  %v717_v21 = vmul.f32 %v1424_v31, %v712_v60  ;;  %292 = vst.msk [vmem:[#allocation3 + $0x100] sm:$0x3f] %vm106_vm4, %v276_v16  ;;  %v692_v18 = vadd.f32 %v688_v23, %v678_v11  ;;  %v718_v57 = vmul.f32 %v1424_v31, %v713_v63  ;;  %v762_v61 = vld [vmem:[#allocation3 + $0xc4] sm:$0xff]  ;;  %v763_v26 = vld [vmem:[#allocation3 + $0xcc] sm:$0xff] }
 0x14e   :  { %v730_v13 = vadd.f32 %v726_v55, %v716_v12  ;;  %v727_v5 = vmul.f32 %v1438_v35, %v722_v51  ;;  %v736_v22 = vld [vmem:[#allocation3 + $0xda] sm:$0xff]  ;;  %v680_v30 = vadd.f32 %v676_v2, %v666_v48  ;;  %v693_v39 = vadd.f32 %v689_v17, %v679_v7 }
 0x14f   :  { %v750_v25 = vld [vmem:[#allocation3 + $0xdb] sm:$0xff]  ;;  %v741_v0 = vmul.f32 %v1441_v36, %v736_v22  ;;  %v701_v12 = vmul.f32 %v1447_v38, %v696_v1  ;;  %v702_v59 = vmul.f32 %v1447_v38, %v697_v27  ;;  %v751_v34 = vld [vmem:[#allocation3 + $0xe3] sm:$0xff]  ;;  %v278_v2 = vpop.permute.xlu1 %277  ;;  %v280_v11 = vpop.permute.xlu0 %279  ;;  %v703_v15 = vmul.f32 %v1447_v38, %v698_v33 }
 0x150   :  { %v755_v37 = vmul.f32 %v1450_v40, %v750_v25  ;;  %v731_v50 = vadd.f32 %v727_v5, %v717_v21  ;;  %v694_v14 = vadd.f32 %v690_v4, %v680_v30  ;;  %v723_v8 = vld [vmem:[#allocation3 + $0xe1] sm:$0xff]  ;;  %v704_v31 = vmul.f32 %v1447_v38, %v699_v58  ;;  %v804_v1 = vld [vmem:[#allocation3 + $0xf0] sm:$0xff]  ;;  %293 = vst.msk [vmem:[#allocation3 + $0x108] sm:$0xff] %vm103_vm3, %v278_v2 }
 0x151   :  { %v737_v56 = vld [vmem:[#allocation3 + $0xe2] sm:$0xff]  ;;  %v743_v23 = vadd.f32 %v739_v52, %v729_v10  ;;  %v744_v55 = vadd.f32 %v740_v29, %v730_v13  ;;  %v728_v7 = vmul.f32 %v1438_v35, %v723_v8  ;;  %v756_v17 = vmul.f32 %v1450_v40, %v751_v34  ;;  %294 = vst.msk [vmem:[#allocation3 + $0x110] sm:$0xff] %vm103_vm3, %v280_v11 }
 0x152   :  { %v764_v32 = vld [vmem:[#allocation3 + $0xdc] sm:$0xff]  ;;  %v742_v48 = vmul.f32 %v1441_v36, %v737_v56  ;;  %v1645_v27 = vadd.f32 %v701_v12, %v691_v62  ;;  %v765_v33 = vld [vmem:[#allocation3 + $0xe4] sm:$0xff]  ;;  %v809_v38 = vmul.f32 %v1453_v41, %v804_v1  ;;  %v1648_v52 = vadd.f32 %v702_v59, %v692_v18 }
 0x153   :  { %v1650_v10 = vadd.f32 %v703_v15, %v693_v39  ;;  %v745_v29 = vadd.f32 %v741_v0, %v731_v50  ;;  %v732_v35 = vadd.f32 %v728_v7, %v718_v57  ;;  %v1652_v13 = vadd.f32 %v704_v31, %v694_v14  ;;  %v805_v60 = vld [vmem:[#allocation3 + $0xf8] sm:$0xff]  ;;  %v282_v49 = vpop.permute.xlu1 %281  ;;  %v309_v16 = vpop.permute.xlu0 %308  ;;  %v776_v58 = vld [vmem:[#allocation3 + $0xc5] sm:$0xff]  ;;  %v777_v14 = vld [vmem:[#allocation3 + $0xcd] sm:$0xff] }
 0x154   :  { %v757_v36 = vadd.f32 %v1622_v20, %v743_v23  ;;  %v758_v40 = vadd.f32 %v754_v19, %v744_v55  ;;  %v814_v63 = vld [vmem:[#allocation3 + $0xf1] sm:$0xff]  ;;  %v767_v62 = vmul.f32 %v1465_v45, %v762_v61  ;;  %v768_v21 = vmul.f32 %v1465_v45, %v763_v26  ;;  %v815_v18 = vld [vmem:[#allocation3 + $0xf9] sm:$0xff]  ;;  %295 = vst.msk [vmem:[#allocation3 + $0x118] sm:$0x3f] %vm106_vm4, %v282_v49  ;;  %v790_v2 = vld [vmem:[#allocation3 + $0xc6] sm:$0xff] }
 0x155   :  { %v828_v51 = vld [vmem:[#allocation3 + $0xf2] sm:$0xff]  ;;  %v759_v4 = vadd.f32 %v755_v37, %v745_v29  ;;  %v769_v5 = vmul.f32 %v1465_v45, %v764_v32  ;;  %v810_v22 = vmul.f32 %v1453_v41, %v805_v60  ;;  %v819_v25 = vmul.f32 %v1456_v42, %v814_v63  ;;  %327 = vst.msk [vmem:[#allocation3 + $0x120] sm:$0xff] %vm103_vm3, %v309_v16  ;;  %v829_v39 = vld [vmem:[#allocation3 + $0xfa] sm:$0xff] }
 0x156   :  { %v842_v30 = vld [vmem:[#allocation3 + $0xf3] sm:$0xff]  ;;  %v746_v20 = vadd.f32 %v742_v48, %v732_v35  ;;  %v770_v19 = vmul.f32 %v1465_v45, %v765_v33  ;;  %v1664_v57 = vmul.f32 %v1459_v43, %v828_v51  ;;  %v820_v37 = vmul.f32 %v1456_v42, %v815_v18  ;;  %v843_v61 = vld [vmem:[#allocation3 + $0xfb] sm:$0xff]  ;;  %v779_v45 = vld [vmem:[#allocation3 + $0xe5] sm:$0xff] }
 0x157   :  { %v1667_v0 = vmul.f32 %v1462_v44, %v842_v30  ;;  %v771_v50 = vadd.f32 %v767_v62, %v757_v36  ;;  %v823_v12 = vadd.f32 %v819_v25, %v809_v38  ;;  %v834_v59 = vmul.f32 %v1459_v43, %v829_v39  ;;  %v778_v34 = vld [vmem:[#allocation3 + $0xdd] sm:$0xff]  ;;  %v806_v31 = vld [vmem:[#allocation3 + $0x108] sm:$0xff]  ;;  %v311_v26 = vpop.permute.xlu1 %310  ;;  %v313_v32 = vpop.permute.xlu0 %312 }
 0x158   :  { %v760_v8 = vadd.f32 %v756_v17, %v746_v20  ;;  %v772_v56 = vadd.f32 %v768_v21, %v758_v40  ;;  %v824_v11 = vadd.f32 %v820_v37, %v810_v22  ;;  %v1672_v15 = vmul.f32 %v1462_v44, %v843_v61  ;;  %v807_v23 = vld [vmem:[#allocation3 + $0x110] sm:$0xff]  ;;  %328 = vst.msk [vmem:[#allocation3 + $0x128] sm:$0xff] %vm103_vm3, %v311_v26  ;;  %v792_v49 = vld [vmem:[#allocation3 + $0xde] sm:$0xff] }
 0x159   :  { %v816_v55 = vld [vmem:[#allocation3 + $0x109] sm:$0xff]  ;;  %v773_v7 = vadd.f32 %v769_v5, %v759_v4  ;;  %v781_v48 = vmul.f32 %v1468_v46, %v776_v58  ;;  %v811_v1 = vmul.f32 %v1453_v41, %v806_v31  ;;  %329 = vst.msk [vmem:[#allocation3 + $0x130] sm:$0x3f] %vm106_vm4, %v313_v32  ;;  %v782_v35 = vmul.f32 %v1468_v46, %v777_v14  ;;  %v856_v61 = vld [vmem:[#allocation3 + $0xf4] sm:$0xff] }
 0x15a   :  { %v821_v17 = vmul.f32 %v1456_v42, %v816_v55  ;;  %v830_v33 = vld [vmem:[#allocation3 + $0x10a] sm:$0xff]  ;;  %v774_v29 = vadd.f32 %v770_v19, %v760_v8  ;;  %v812_v40 = vmul.f32 %v1453_v41, %v807_v23  ;;  %v783_v63 = vmul.f32 %v1468_v46, %v778_v34  ;;  %v1822_v31 = vld [vmem:[#allocation18_spill] sm:$0xff] }
 0x15b   :  { %v844_v38 = vld [vmem:[#allocation3 + $0x10b] sm:$0xff]  ;;  %v835_v60 = vmul.f32 %v1459_v43, %v830_v33  ;;  %v784_v51 = vmul.f32 %v1468_v46, %v779_v45  ;;  %v785_v62 = vadd.f32 %v781_v48, %v771_v50  ;;  %v786_v21 = vadd.f32 %v782_v35, %v772_v56  ;;  %v845_v30 = vld [vmem:[#allocation3 + $0x113] sm:$0xff]  ;;  %v315_v18 = vpop.permute.xlu1 %314  ;;  %v317_v20 = vpop.permute.xlu0 %316  ;;  %v857_v46 = vld [vmem:[#allocation3 + $0xfc] sm:$0xff] }
 0x15c   :  { %v791_v36 = vld [vmem:[#allocation3 + $0xce] sm:$0xff]  ;;  %v825_v16 = vadd.f32 %v821_v17, %v811_v1  ;;  %v849_v4 = vmul.f32 %v1462_v44, %v844_v38  ;;  %v793_v5 = vld [vmem:[#allocation3 + $0xe6] sm:$0xff]  ;;  %v787_v19 = vadd.f32 %v783_v63, %v773_v7  ;;  %v850_v50 = vmul.f32 %v1462_v44, %v845_v30  ;;  %330 = vst.msk [vmem:[#allocation3 + $0x138] sm:$0xff] %vm103_vm3, %v315_v18 }
 0x15d   :  { %v817_v22 = vld [vmem:[#allocation3 + $0x111] sm:$0xff]  ;;  %v788_v41 = vadd.f32 %v784_v51, %v774_v29  ;;  %v898_v56 = vld [vmem:[#allocation3 + $0x120] sm:$0xff]  ;;  %331 = vst.msk [vmem:[#allocation3 + $0x140] sm:$0xff] %vm103_vm3, %v317_v20  ;;  %v837_v32 = vadd.f32 %v1664_v57, %v823_v12  ;;  %v838_v7 = vadd.f32 %v834_v59, %v824_v11  ;;  %v1825_v11 = vld [vmem:[#allocation20_spill] sm:$0xff] }
 0x15e   :  { %v831_v25 = vld [vmem:[#allocation3 + $0x112] sm:$0xff]  ;;  %v822_v14 = vmul.f32 %v1456_v42, %v817_v22  ;;  %v839_v35 = vadd.f32 %v835_v60, %v825_v16  ;;  %v871_v59 = vld [vmem:[#allocation3 + $0xfd] sm:$0xff] }
 0x15f   :  { %v1821_v58 = vld [vmem:[#allocation17_spill] sm:$0xff]  ;;  %v836_v8 = vmul.f32 %v1459_v43, %v831_v25  ;;  %v899_v1 = vld [vmem:[#allocation3 + $0x128] sm:$0xff]  ;;  %v319_v38 = vpop.permute.xlu1 %318  ;;  %v851_v16 = vadd.f32 %v1667_v0, %v837_v32  ;;  %v852_v25 = vadd.f32 %v1672_v15, %v838_v7 }
 0x160   :  { %v795_v37 = vmul.f32 %v1821_v58, %v790_v2  ;;  %v796_v39 = vmul.f32 %v1821_v58, %v791_v36  ;;  %v797_v34 = vmul.f32 %v1821_v58, %v792_v49  ;;  %v858_v45 = vld [vmem:[#allocation3 + $0x10c] sm:$0xff]  ;;  %v1694_v2 = vmul.f32 %v1822_v31, %v898_v56  ;;  %v859_v26 = vld [vmem:[#allocation3 + $0x114] sm:$0xff]  ;;  %v908_v17 = vld [vmem:[#allocation3 + $0x121] sm:$0xff]  ;;  %332 = vst.msk [vmem:[#allocation3 + $0x148] sm:$0x3f] %vm106_vm4, %v319_v38 }
 0x161   :  { %v798_v23 = vmul.f32 %v1821_v58, %v793_v5  ;;  %v826_v43 = vadd.f32 %v822_v14, %v812_v40  ;;  %v870_v48 = vld [vmem:[#allocation3 + $0xf5] sm:$0xff]  ;;  %v922_v33 = vld [vmem:[#allocation3 + $0x122] sm:$0xff]  ;;  %v904_v40 = vmul.f32 %v1822_v31, %v899_v1  ;;  %v923_v5 = vld [vmem:[#allocation3 + $0x12a] sm:$0xff]  ;;  %v853_v20 = vadd.f32 %v849_v4, %v839_v35 }
 0x162   :  { %v1697_v55 = vadd.f32 %v795_v37, %v785_v62  ;;  %v1699_v42 = vadd.f32 %v796_v39, %v786_v21  ;;  %v1701_v44 = vadd.f32 %v797_v34, %v787_v19  ;;  %v1823_v36 = vld [vmem:[#allocation21_spill] sm:$0xff]  ;;  %v1824_v49 = vld [vmem:[#allocation19_spill] sm:$0xff]  ;;  %v927_v22 = vmul.f32 %v1825_v11, %v922_v33  ;;  %v1826_v56 = vld [vmem:[#allocation22_spill] sm:$0xff] }
 0x163   :  { %v1704_v29 = vadd.f32 %v798_v23, %v788_v41  ;;  %v861_v63 = vmul.f32 %v1823_v36, %v856_v61  ;;  %v862_v51 = vmul.f32 %v1823_v36, %v857_v46  ;;  %v913_v62 = vmul.f32 %v1824_v49, %v908_v17  ;;  %v909_v21 = vld [vmem:[#allocation3 + $0x129] sm:$0xff]  ;;  %v873_v58 = vld [vmem:[#allocation3 + $0x115] sm:$0xff] }
 0x164   :  { %v840_v57 = vadd.f32 %v836_v8, %v826_v43  ;;  %v863_v12 = vmul.f32 %v1823_v36, %v858_v45  ;;  %v914_v60 = vmul.f32 %v1824_v49, %v909_v21  ;;  %v872_v30 = vld [vmem:[#allocation3 + $0x10d] sm:$0xff]  ;;  %v928_v18 = vmul.f32 %v1825_v11, %v923_v5  ;;  %v884_v37 = vld [vmem:[#allocation3 + $0xf6] sm:$0xff]  ;;  %v901_v61 = vld [vmem:[#allocation3 + $0x140] sm:$0xff] }
 0x165   :  { %v864_v41 = vmul.f32 %v1823_v36, %v859_v26  ;;  %v900_v39 = vld [vmem:[#allocation3 + $0x138] sm:$0xff]  ;;  %v865_v14 = vadd.f32 %v861_v63, %v851_v16  ;;  %v866_v8 = vadd.f32 %v862_v51, %v852_v25  ;;  %v875_v34 = vmul.f32 %v1826_v56, %v870_v48  ;;  %v886_v26 = vld [vmem:[#allocation3 + $0x10e] sm:$0xff]  ;;  %v1827_v36 = vld [vmem:[#allocation23_spill] sm:$0xff] }
 0x166   :  { %v854_v19 = vadd.f32 %v850_v50, %v840_v57  ;;  %v910_v46 = vld [vmem:[#allocation3 + $0x139] sm:$0xff]  ;;  %v876_v0 = vmul.f32 %v1826_v56, %v871_v59  ;;  %v905_v15 = vmul.f32 %v1822_v31, %v900_v39  ;;  %v906_v45 = vmul.f32 %v1822_v31, %v901_v61  ;;  %v936_v31 = vld [vmem:[#allocation3 + $0x123] sm:$0xff]  ;;  %v937_v16 = vld [vmem:[#allocation3 + $0x12b] sm:$0xff] }
 0x167   :  { %v924_v23 = vld [vmem:[#allocation3 + $0x13a] sm:$0xff]  ;;  %v867_v4 = vadd.f32 %v863_v12, %v853_v20  ;;  %v877_v50 = vmul.f32 %v1826_v56, %v872_v30  ;;  %v915_v32 = vmul.f32 %v1824_v49, %v910_v46  ;;  %v878_v1 = vmul.f32 %v1826_v56, %v873_v58  ;;  %v925_v21 = vld [vmem:[#allocation3 + $0x142] sm:$0xff] }
 0x168   :  { %v885_v43 = vld [vmem:[#allocation3 + $0xfe] sm:$0xff]  ;;  %v868_v7 = vadd.f32 %v864_v41, %v854_v19  ;;  %v879_v17 = vadd.f32 %v875_v34, %v865_v14  ;;  %v887_v33 = vld [vmem:[#allocation3 + $0x116] sm:$0xff]  ;;  %v929_v48 = vmul.f32 %v1825_v11, %v924_v23  ;;  %v880_v38 = vadd.f32 %v876_v0, %v866_v8  ;;  %v951_v0 = vld [vmem:[#allocation3 + $0x12c] sm:$0xff] }
 0x169   :  { %v881_v35 = vadd.f32 %v877_v50, %v867_v4  ;;  %v889_v63 = vmul.f32 %v1827_v36, %v884_v37  ;;  %v911_v51 = vld [vmem:[#allocation3 + $0x141] sm:$0xff]  ;;  %v890_v57 = vmul.f32 %v1827_v36, %v885_v43  ;;  %v891_v12 = vmul.f32 %v1827_v36, %v886_v26 }
 0x16a   :  { %v882_v5 = vadd.f32 %v878_v1, %v868_v7  ;;  %v917_v59 = vadd.f32 %v913_v62, %v1694_v2  ;;  %v938_v25 = vld [vmem:[#allocation3 + $0x13b] sm:$0xff]  ;;  %v916_v30 = vmul.f32 %v1824_v49, %v911_v51  ;;  %v930_v20 = vmul.f32 %v1825_v11, %v925_v21  ;;  %v939_v58 = vld [vmem:[#allocation3 + $0x143] sm:$0xff]  ;;  %v979_v21 = vld [vmem:[#allocation3 + $0x12e] sm:$0xff] }
 0x16b   :  { %v892_v19 = vmul.f32 %v1827_v36, %v887_v33  ;;  %v1733_v41 = vadd.f32 %v889_v63, %v879_v17  ;;  %v894_v37 = vadd.f32 %v890_v57, %v880_v38  ;;  %v895_v39 = vadd.f32 %v891_v12, %v881_v35  ;;  %v950_v14 = vld [vmem:[#allocation3 + $0x124] sm:$0xff]  ;;  %v952_v23 = vld [vmem:[#allocation3 + $0x13c] sm:$0xff] }
 0x16c   :  { %v918_v61 = vadd.f32 %v914_v60, %v904_v40  ;;  %v919_v46 = vadd.f32 %v915_v32, %v905_v15  ;;  %v920_v56 = vadd.f32 %v916_v30, %v906_v45  ;;  %v931_v34 = vadd.f32 %v927_v22, %v917_v59  ;;  %v1828_v2 = vld [vmem:[#allocation24_spill] sm:$0xff]  ;;  %v1829_v15 = vld [vmem:[#allocation25_spill] sm:$0xff]  ;;  %v966_v22 = vld [vmem:[#allocation3 + $0x13d] sm:$0xff] }
 0x16d   :  { %v896_v8 = vadd.f32 %v892_v19, %v882_v5  ;;  %v941_v62 = vmul.f32 %v1828_v2, %v936_v31  ;;  %v942_v11 = vmul.f32 %v1828_v2, %v937_v16  ;;  %v943_v50 = vmul.f32 %v1828_v2, %v938_v25  ;;  %v953_v43 = vld [vmem:[#allocation3 + $0x144] sm:$0xff]  ;;  %v965_v45 = vld [vmem:[#allocation3 + $0x12d] sm:$0xff]  ;;  %v1830_v31 = vld [vmem:[#allocation26_spill] sm:$0xff] }
 0x16e   :  { %v932_v49 = vadd.f32 %v928_v18, %v918_v61  ;;  %v933_v4 = vadd.f32 %v929_v48, %v919_v46  ;;  %v964_v26 = vld [vmem:[#allocation3 + $0x125] sm:$0xff]  ;;  %v934_v7 = vadd.f32 %v930_v20, %v920_v56  ;;  %v944_v40 = vmul.f32 %v1828_v2, %v939_v58 }
 0x16f   :  { %v945_v60 = vadd.f32 %v941_v62, %v931_v34  ;;  %v955_v32 = vmul.f32 %v1829_v15, %v950_v14  ;;  %v956_v33 = vmul.f32 %v1829_v15, %v951_v0  ;;  %v957_v18 = vmul.f32 %v1829_v15, %v952_v23  ;;  %v967_v48 = vld [vmem:[#allocation3 + $0x145] sm:$0xff]  ;;  %v1832_v23 = vld [vmem:[#allocation13_spill] sm:$0xff] }
 0x170   :  { %v946_v1 = vadd.f32 %v942_v11, %v932_v49  ;;  %v947_v17 = vadd.f32 %v943_v50, %v933_v4  ;;  %v978_v38 = vld [vmem:[#allocation3 + $0x126] sm:$0xff]  ;;  %v948_v35 = vadd.f32 %v944_v40, %v934_v7  ;;  %v958_v36 = vmul.f32 %v1829_v15, %v953_v43  ;;  %v980_v5 = vld [vmem:[#allocation3 + $0x13e] sm:$0xff] }
 0x171   :  { %v959_v63 = vadd.f32 %v955_v32, %v945_v60  ;;  %v969_v51 = vmul.f32 %v1830_v31, %v964_v26  ;;  %v970_v59 = vmul.f32 %v1830_v31, %v965_v45  ;;  %v971_v16 = vmul.f32 %v1830_v31, %v966_v22  ;;  %v981_v25 = vld [vmem:[#allocation3 + $0x146] sm:$0xff]  ;;  %v1833_v50 = vld [vmem:[#allocation14_spill] sm:$0xff] }
 0x172   :  { %v960_v57 = vadd.f32 %v956_v33, %v946_v1  ;;  %v961_v12 = vadd.f32 %v957_v18, %v947_v17  ;;  %v962_v30 = vadd.f32 %v958_v36, %v948_v35  ;;  %v972_v20 = vmul.f32 %v1830_v31, %v967_v48  ;;  %v1831_v58 = vld [vmem:[#allocation27_spill] sm:$0xff]  ;;  %v1835_v22 = vld [vmem:[#allocation16_spill] sm:$0xff] }
 0x173   :  { %v973_v19 = vadd.f32 %v969_v51, %v959_v63  ;;  %v983_v61 = vmul.f32 %v1831_v58, %v978_v38  ;;  %v984_v56 = vmul.f32 %v1831_v58, %v979_v21  ;;  %v985_v34 = vmul.f32 %v1831_v58, %v980_v5  ;;  %v1834_v26 = vld [vmem:[#allocation15_spill] sm:$0xff] }
 0x174   :  { %v974_v46 = vadd.f32 %v970_v59, %v960_v57  ;;  %v975_v14 = vadd.f32 %v971_v16, %v961_v12  ;;  %v976_v2 = vadd.f32 %v972_v20, %v962_v30  ;;  %v986_v62 = vmul.f32 %v1831_v58, %v981_v25 }
 0x175   :  { %v987_v0 = vadd.f32 %v983_v61, %v973_v19  ;;  %v991_v49 = vadd.f32 %v1546_v54, %v1832_v23  ;;  %v992_v43 = vadd.f32 %v1549_v9, %v1833_v50  ;;  %v993_v7 = vadd.f32 %v1559_v3, %v1834_v26 }
 0x176   :  { %v988_v4 = vadd.f32 %v984_v56, %v974_v46  ;;  %v989_v11 = vadd.f32 %v985_v34, %v975_v14  ;;  %v990_v40 = vadd.f32 %v986_v62, %v976_v2  ;;  %v995_v60 = vadd.f32 %v1645_v27, %v1596_v28 }
 0x177   :  { %v996_v15 = vadd.f32 %v1648_v52, %v1598_v6  ;;  %v997_v32 = vadd.f32 %v1650_v10, %v1600_v47  ;;  %v998_v54 = vadd.f32 %v1652_v13, %v1609_v53  ;;  %v1003_v45 = vadd.f32 %v1733_v41, %v1697_v55 }
 0x178   :  { %v1004_v9 = vadd.f32 %v894_v37, %v1699_v42  ;;  %v1005_v3 = vadd.f32 %v895_v39, %v1701_v44  ;;  %v994_v1 = vadd.f32 %v1571_v24, %v1835_v22  ;;  %v999_v28 = vadd.f32 %v995_v60, %v991_v49 }
 0x179   :  { %v1000_v27 = vadd.f32 %v996_v15, %v992_v43  ;;  %v1006_v6 = vadd.f32 %v896_v8, %v1704_v29  ;;  %v1001_v52 = vadd.f32 %v997_v32, %v993_v7  ;;  %v1007_v17 = vadd.f32 %v1003_v45, %v987_v0 }
 0x17a   :  { %v1008_v47 = vadd.f32 %v1004_v9, %v988_v4  ;;  %v1009_v10 = vadd.f32 %v1005_v3, %v989_v11  ;;  %v1002_v33 = vadd.f32 %v998_v54, %v994_v1 }
 0x17b   :  { %v1010_v53 = vadd.f32 %v1006_v6, %v990_v40  ;;  %v1011_v13 = vadd.f32 %v1007_v17, %v999_v28 }
 0x17c   :  { %v1012_v18 = vadd.f32 %v1008_v47, %v1000_v27  ;;  %v1013_v55 = vadd.f32 %v1009_v10, %v1001_v52 }
 0x17d   :  { %v1014_v41 = vadd.f32 %v1010_v53, %v1002_v33  ;;  %v1015_v42 = vsub.f32 0.0, %v1011_v13 }
 0x17e   :  { %v1016_v37 = vsub.f32 0.0, %v1012_v18  ;;  %v1017_v44 = vsub.f32 0.0, %v1013_v55 }
 0x17f   :  { %v1018_v39 = vsub.f32 0.0, %v1014_v41  ;;  %v1019_v48 = vmul.f32 1.442695, %v1015_v42 }
 0x180   :  { %v1021_v24 = vmul.f32 1.442695, %v1016_v37  ;;  %v1023_v38 = vmul.f32 1.442695, %v1017_v44 }
 0x181   :  { %v1025_v35 = vmul.f32 1.442695, %v1018_v39  ;;  %1122 = vpow2.f32 %v1019_v48 }
 0x182   :  { %1124 = vpow2.f32 %v1021_v24 }
 0x183   :  { %1126 = vpow2.f32 %v1023_v38 }
 0x184   :  { %1128 = vpow2.f32 %v1025_v35 }
 0x18b   :  { %v1123_v29 = vpop.eup %1122 }
 0x18c   :  { %v1125_v8 = vpop.eup %1124  ;;  %v1027_v36 = vadd.f32 1.0, %v1123_v29 }
 0x18d   :  { %v1127_v63 = vpop.eup %1126  ;;  %v1028_v31 = vadd.f32 1.0, %v1125_v8 }
 0x18e   :  { %v1129_v51 = vpop.eup %1128  ;;  %v1029_v21 = vadd.f32 1.0, %v1127_v63  ;;  %1130 = vrcp.f32 %v1027_v36 }
 0x18f   :  { %v1030_v5 = vadd.f32 1.0, %v1129_v51  ;;  %1132 = vrcp.f32 %v1028_v31 }
 0x190   :  { %1134 = vrcp.f32 %v1029_v21 }
 0x191   :  { %1136 = vrcp.f32 %v1030_v5 }
 0x198   :  { %v1131_v57 = vpop.eup %1130 }
 0x199   :  { %v1133_v12 = vpop.eup %1132  ;;  %1039 = vst.msk [vmem:[#allocation9] sm:$0xff] %vm103_vm3, %v1131_v57 }
 0x19a   :  { %v1135_v59 = vpop.eup %1134  ;;  %1040 = vst.msk [vmem:[#allocation9 + $0x8] sm:$0xff] %vm103_vm3, %v1133_v12 }
 0x19b   :  { %v1137_v16 = vpop.eup %1136  ;;  %1041 = vst.msk [vmem:[#allocation9 + $0x10] sm:$0xff] %vm103_vm3, %v1135_v59 }
 0x19c   :  { %1042 = vst.msk [vmem:[#allocation9 + $0x18] sm:$0xff] %vm103_vm3, %v1137_v16 }
 0x19d   :  { %1181 = shalt.err (!%p1178_p1)
}
 0x19e   :  { %s1182_s6 = scalar_lea.hbm %s1793_s2, 512 }
 0x19f   :  { %p1183_p2 = scmp.ne.s32.totalorder %s1793_s2, %s1182_s6  ;;  %p1186_p3 = scmp.lt.u32.totalorder %s1182_s6, %s1793_s2 }
 0x1a1   :  { %p1188_p4 = pnand %p1186_p3, %p1183_p2 }
 0x1a3   :  { %1191 = shalt.err (!%p1188_p4)
}
 0x1a4   :  { %s1836_s11 = smov 128  }
 0x1a5   :  { %1054 = dma.vmem_to_hbm [thread:$0]  %s1049_s3, 512, %s1793_s2, [#allocation6], %s1836_s11, %s1836_s11, %s1200_s20  }
 0x1a6   :  { %1196 = dma.done.wait [#allocation6], 512  }
 0x1a7   :  { %1197 = vsyncadd [#allocation6], 4294966784 }
 0x1a8   :  { %1058 = vsyncpa [#allocation5], 1 }
 0x1a9   :  { %1059 = vsyncpa [#allocation6], 1 }
 0x1aa   :  { %1060 = vsyncpa [#allocation7], 1 }

</bundles_post_ra>
